<compile_context>
chip_gen: v7x
topology: tpu7x:2x2x1
jax: 0.10.0
libtpu: 0.0.40
codegen_flags: <defaults>
</compile_context>

<pallas_src>
import jax
import jax.numpy as jnp
from jax.experimental import pallas as pl
from jax.experimental.pallas import tpu as pltpu

LANE = 128  # TPU vreg lane width


def motion_encoder_kernel(obs_ref, wx_ref, whh_ref, b_ref, out_ref, gx_ref):
    """One batch tile of the fused (embedding + LSTM) forward pass.

    obs_ref: (T, Bt, input_dim)  f32
    wx_ref:  (input_dim, 4*Hp)   bf16  fused (w_emb @ w_ih), gate-padded to Hp
    whh_ref: (Hp, 4*Hp)          bf16  gate-padded recurrent weights
    b_ref:   (1, 4*Hp)           f32   fused bias (b_ih+b_hh + b_emb@w_ih), padded
    out_ref: (T, Bt, Hp)         f32   hidden state for every time step
    gx_ref:  (T, Bt, 4*Hp)       f32   scratch: hoisted input-gate projection
    """
    T, Bt, input_dim = obs_ref.shape
    Hp = whh_ref.shape[0]
    G = 4 * Hp

    w_x = wx_ref[...]
    w_hh = whh_ref[...]
    bias = b_ref[...]

    # ---- Hoisted input projection: one big MXU GEMM over all T*Bt rows ----
    x2d = obs_ref[...].reshape(T * Bt, input_dim).astype(w_x.dtype)
    gx = jnp.dot(x2d, w_x, preferred_element_type=jnp.float32) + bias
    gx_ref[...] = gx.reshape(T, Bt, G)

    # ---- Serial recurrence: only h @ w_hh remains on the critical path ----
    h = jnp.zeros((Bt, Hp), jnp.float32)
    c = jnp.zeros((Bt, Hp), jnp.float32)
    for t in range(T):  # fully unrolled: T is static and small
        gates = gx_ref[t] + jnp.dot(h.astype(w_hh.dtype), w_hh,
                                    preferred_element_type=jnp.float32)
        # PyTorch gate order: i, f, g, o — each slice is a full 128-lane vreg.
        i = jax.nn.sigmoid(gates[:, 0 * Hp:1 * Hp])
        f = jax.nn.sigmoid(gates[:, 1 * Hp:2 * Hp])
        g = jnp.tanh(gates[:, 2 * Hp:3 * Hp])
        o = jax.nn.sigmoid(gates[:, 3 * Hp:4 * Hp])
        c = f * c + i * g
        h = o * jnp.tanh(c)
        out_ref[t] = h  # lane-dense (Hp=128) unmasked store


def _pad_gate_cols(w, H, Hp):
    """(..., 4H) -> (..., 4Hp): zero-pad each of the 4 gate blocks from H to Hp."""
    lead = w.shape[:-1]
    w4 = w.reshape(lead + (4, H))
    pad = [(0, 0)] * len(lead) + [(0, 0), (0, Hp - H)]
    return jnp.pad(w4, pad).reshape(lead + (4 * Hp,))


def motion_encoder(obs_traj, params, *, batch_tile=None):
    """obs_traj: (T, B, input_dim) f32 -> (output (T, B, H), final_h (1, B, H))."""
    T, B, input_dim = obs_traj.shape
    H = params["w_hh"].shape[0]
    Hp = ((H + LANE - 1) // LANE) * LANE
    Hp = max(Hp, LANE)

    # Fold the spatial-embedding Linear into the LSTM input weights (exact).
    w_x = params["w_emb"] @ params["w_ih"]                      # (input_dim, 4H)
    b_fused = params["b"] + params["b_emb"] @ params["w_ih"]    # (1, 4H)

    # Pad each gate block H -> Hp; zero-pad w_hh rows H -> Hp; cast MXU weights
    # to bf16 (f32 accumulation in-kernel), keep the bias in f32.
    w_x_p = _pad_gate_cols(w_x, H, Hp).astype(jnp.bfloat16)               # (I, 4Hp)
    w_hh_p = _pad_gate_cols(params["w_hh"], H, Hp)                        # (H, 4Hp)
    w_hh_p = jnp.pad(w_hh_p, ((0, Hp - H), (0, 0))).astype(jnp.bfloat16)  # (Hp, 4Hp)
    b_p = _pad_gate_cols(b_fused, H, Hp)                                  # (1, 4Hp)

    if batch_tile is None:
        batch_tile = B if B <= LANE else LANE
    assert B % batch_tile == 0, "batch must be divisible by batch_tile"
    n_b = B // batch_tile

    out_padded = pl.pallas_call(
        motion_encoder_kernel,
        out_shape=jax.ShapeDtypeStruct((T, B, Hp), jnp.float32),
        grid=(n_b,),
        in_specs=[
            pl.BlockSpec((T, batch_tile, input_dim), lambda b: (0, b, 0)),
            pl.BlockSpec((input_dim, 4 * Hp), lambda b: (0, 0)),
            pl.BlockSpec((Hp, 4 * Hp), lambda b: (0, 0)),
            pl.BlockSpec((1, 4 * Hp), lambda b: (0, 0)),
        ],
        out_specs=pl.BlockSpec((T, batch_tile, Hp), lambda b: (0, b, 0)),
        scratch_shapes=[pltpu.VMEM((T, batch_tile, 4 * Hp), jnp.float32)],
        compiler_params=pltpu.CompilerParams(
            dimension_semantics=("parallel",)),
    )(obs_traj, w_x_p, w_hh_p, b_p)

    output = out_padded[..., :H]     # drop lane padding
    final_h = output[-1:]            # final hidden state == last output step
    return output, final_h


def make_params(key, input_dim=2, embedding_dim=16, encoder_h_dim=32):
    """Deterministic synthetic parameters (same shapes as the PyTorch module)."""
    k1, k2, k3, k4, k5, k6 = jax.random.split(key, 6)
    s = 0.1
    w_emb = s * jax.random.normal(k1, (input_dim, embedding_dim), jnp.float32)
    b_emb = s * jax.random.normal(k2, (1, embedding_dim), jnp.float32)
    w_ih = s * jax.random.normal(k3, (embedding_dim, 4 * encoder_h_dim), jnp.float32)
    w_hh = s * jax.random.normal(k4, (encoder_h_dim, 4 * encoder_h_dim), jnp.float32)
    b_ih = s * jax.random.normal(k5, (1, 4 * encoder_h_dim), jnp.float32)
    b_hh = s * jax.random.normal(k6, (1, 4 * encoder_h_dim), jnp.float32)
    return {"w_emb": w_emb, "b_emb": b_emb, "w_ih": w_ih, "w_hh": w_hh,
            "b": b_ih + b_hh}


def motion_encoder_ref(obs_traj, params):
    """Pure-JAX f32 reference (mirrors PyTorch Linear + nn.LSTM semantics)."""
    T, B, _ = obs_traj.shape
    H = params["w_hh"].shape[0]
    emb = obs_traj @ params["w_emb"] + params["b_emb"]
    h = jnp.zeros((B, H), jnp.float32)
    c = jnp.zeros((B, H), jnp.float32)
    outs = []
    for t in range(T):
        gates = emb[t] @ params["w_ih"] + h @ params["w_hh"] + params["b"]
        i = jax.nn.sigmoid(gates[:, 0 * H:1 * H])
        f = jax.nn.sigmoid(gates[:, 1 * H:2 * H])
        g = jnp.tanh(gates[:, 2 * H:3 * H])
        o = jax.nn.sigmoid(gates[:, 3 * H:4 * H])
        c = f * c + i * g
        h = o * jnp.tanh(c)
        outs.append(h)
    return jnp.stack(outs, axis=0), h[None]


if __name__ == "__main__":
    T, B, input_dim = 8, 8, 2
    embedding_dim, encoder_h_dim = 16, 32

    key = jax.random.PRNGKey(0)
    k_x, k_p = jax.random.split(key)
    obs_traj = jax.random.normal(k_x, (T, B, input_dim), jnp.float32)
    params = make_params(k_p, input_dim, embedding_dim, encoder_h_dim)

    output, final_h = motion_encoder(obs_traj, params)
    output = jax.block_until_ready(output)
    final_h = jax.block_until_ready(final_h)

    assert output.shape == (T, B, encoder_h_dim)
    assert final_h.shape == (1, B, encoder_h_dim)

    out_ref, final_ref = motion_encoder_ref(obs_traj, params)
    # Slightly relaxed tolerance vs. 1e-3: matmul weights/operands run through
    # the MXU in bf16 (f32 accumulation); state and nonlinearities stay in f32.
    assert jnp.allclose(output, out_ref, atol=2e-3, rtol=2e-3)
    assert jnp.allclose(final_h, final_ref, atol=2e-3, rtol=2e-3)

    print("KERNEL_OK")
</pallas_src>

<mosaic_0001>
module attributes {stable_mosaic.version = 11 : i64} {
  func.func @motion_encoder_kernel(%arg0: i32, %arg1: memref<8x8x2xf32, #tpu.memory_space<vmem>>, %arg2: memref<2x512xbf16, #tpu.memory_space<vmem>>, %arg3: memref<128x512xbf16, #tpu.memory_space<vmem>>, %arg4: memref<1x512xf32, #tpu.memory_space<vmem>>, %arg5: memref<8x8x128xf32, #tpu.memory_space<vmem>>, %arg6: memref<8x8x512xf32, #tpu.memory_space<vmem>>) attributes {dimension_semantics = [#tpu.dimension_semantics<parallel>], iteration_bounds = array<i64: 1>, scalar_prefetch = 0 : i64, scratch_operands = 1 : i64, tpu.core_type = #tpu.core_type<tc>, window_params = [{transform_indices = @transform_0, window_bounds = array<i64: 8, 8, 2>}, {pipeline_mode = #tpu.pipeline_mode<synchronous>, transform_indices = @transform_1, window_bounds = array<i64: 2, 512>}, {pipeline_mode = #tpu.pipeline_mode<synchronous>, transform_indices = @transform_2, window_bounds = array<i64: 128, 512>}, {pipeline_mode = #tpu.pipeline_mode<synchronous>, transform_indices = @transform_3, window_bounds = array<i64: 1, 512>}, {transform_indices = @transform_4, window_bounds = array<i64: 8, 8, 128>}]} {
    %c0 = arith.constant 0 : index
    %c0_0 = arith.constant 0 : index
    %0 = vector.load %arg2[%c0, %c0_0] : memref<2x512xbf16, #tpu.memory_space<vmem>>, vector<2x512xbf16>
    %c0_1 = arith.constant 0 : index
    %c0_2 = arith.constant 0 : index
    %1 = vector.load %arg3[%c0_1, %c0_2] : memref<128x512xbf16, #tpu.memory_space<vmem>>, vector<128x512xbf16>
    %c0_3 = arith.constant 0 : index
    %c0_4 = arith.constant 0 : index
    %2 = vector.load %arg4[%c0_3, %c0_4] : memref<1x512xf32, #tpu.memory_space<vmem>>, vector<1x512xf32>
    %c0_5 = arith.constant 0 : index
    %c0_6 = arith.constant 0 : index
    %c0_7 = arith.constant 0 : index
    %3 = vector.load %arg1[%c0_5, %c0_6, %c0_7] : memref<8x8x2xf32, #tpu.memory_space<vmem>>, vector<8x8x2xf32>
    %4 = vector.shape_cast %3 : vector<8x8x2xf32> to vector<64x2xf32>
    %5 = arith.truncf %4 : vector<64x2xf32> to vector<64x2xbf16>
    %cst = arith.constant dense<0.000000e+00> : vector<64x512xf32>
    %6 = tpu.matmul %5, %0, %cst {dimension_numbers = #tpu.dot_dimension_numbers<[1], [0], [0], [1], [0, 0, 1, 1], [], []>} : vector<64x2xbf16>, vector<2x512xbf16>, vector<64x512xf32> -> vector<64x512xf32>
    %7 = vector.broadcast %2 : vector<1x512xf32> to vector<64x512xf32>
    %8 = arith.addf %6, %7 : vector<64x512xf32>
    %9 = vector.shape_cast %8 : vector<64x512xf32> to vector<8x8x512xf32>
    %c0_8 = arith.constant 0 : index
    %c0_9 = arith.constant 0 : index
    %c0_10 = arith.constant 0 : index
    %10 = vector.load %arg6[%c0_8, %c0_9, %c0_10] : memref<8x8x512xf32, #tpu.memory_space<vmem>>, vector<8x8x512xf32>
    tpu.vector_store %arg6[%c0_8, %c0_9, %c0_10], %9 {strides = array<i32>} : memref<8x8x512xf32, #tpu.memory_space<vmem>>, vector<8x8x512xf32>,
    %cst_11 = arith.constant 0.000000e+00 : f32
    %11 = vector.broadcast %cst_11 : f32 to vector<8x128xf32>
    %cst_12 = arith.constant 0.000000e+00 : f32
    %12 = vector.broadcast %cst_12 : f32 to vector<8x128xf32>
    %c0_13 = arith.constant 0 : index
    %c0_14 = arith.constant 0 : index
    %c0_15 = arith.constant 0 : index
    %13 = vector.load %arg6[%c0_13, %c0_14, %c0_15] : memref<8x8x512xf32, #tpu.memory_space<vmem>>, vector<1x8x512xf32>
    %14 = vector.shape_cast %13 : vector<1x8x512xf32> to vector<8x512xf32>
    %15 = arith.truncf %11 : vector<8x128xf32> to vector<8x128xbf16>
    %cst_16 = arith.constant dense<0.000000e+00> : vector<8x512xf32>
    %16 = tpu.matmul %15, %1, %cst_16 {dimension_numbers = #tpu.dot_dimension_numbers<[1], [0], [0], [1], [0, 0, 1, 1], [], []>} : vector<8x128xbf16>, vector<128x512xbf16>, vector<8x512xf32> -> vector<8x512xf32>
    %17 = arith.addf %14, %16 : vector<8x512xf32>
    %18 = vector.extract_strided_slice %17 {offsets = [0, 0], sizes = [8, 128], strides = [1, 1]} : vector<8x512xf32> to vector<8x128xf32>
    %19 = arith.negf %18 : vector<8x128xf32>
    %20 = math.exp %19 : vector<8x128xf32>
    %cst_17 = arith.constant 1.000000e+00 : f32
    %21 = vector.broadcast %cst_17 : f32 to vector<8x128xf32>
    %22 = arith.addf %21, %20 : vector<8x128xf32>
    %23 = arith.divf %21, %22 : vector<8x128xf32>
    %24 = vector.extract_strided_slice %17 {offsets = [0, 128], sizes = [8, 128], strides = [1, 1]} : vector<8x512xf32> to vector<8x128xf32>
    %25 = arith.negf %24 : vector<8x128xf32>
    %26 = math.exp %25 : vector<8x128xf32>
    %cst_18 = arith.constant 1.000000e+00 : f32
    %27 = vector.broadcast %cst_18 : f32 to vector<8x128xf32>
    %28 = arith.addf %27, %26 : vector<8x128xf32>
    %29 = arith.divf %27, %28 : vector<8x128xf32>
    %30 = vector.extract_strided_slice %17 {offsets = [0, 256], sizes = [8, 128], strides = [1, 1]} : vector<8x512xf32> to vector<8x128xf32>
    %31 = math.tanh %30 : vector<8x128xf32>
    %32 = vector.extract_strided_slice %17 {offsets = [0, 384], sizes = [8, 128], strides = [1, 1]} : vector<8x512xf32> to vector<8x128xf32>
    %33 = arith.negf %32 : vector<8x128xf32>
    %34 = math.exp %33 : vector<8x128xf32>
    %cst_19 = arith.constant 1.000000e+00 : f32
    %35 = vector.broadcast %cst_19 : f32 to vector<8x128xf32>
    %36 = arith.addf %35, %34 : vector<8x128xf32>
    %37 = arith.divf %35, %36 : vector<8x128xf32>
    %38 = arith.mulf %29, %12 : vector<8x128xf32>
    %39 = arith.mulf %23, %31 : vector<8x128xf32>
    %40 = arith.addf %38, %39 : vector<8x128xf32>
    %41 = math.tanh %40 : vector<8x128xf32>
    %42 = arith.mulf %37, %41 : vector<8x128xf32>
    %c0_20 = arith.constant 0 : index
    %c0_21 = arith.constant 0 : index
    %c0_22 = arith.constant 0 : index
    %43 = vector.load %arg5[%c0_20, %c0_21, %c0_22] : memref<8x8x128xf32, #tpu.memory_space<vmem>>, vector<1x8x128xf32>
    %44 = vector.shape_cast %43 : vector<1x8x128xf32> to vector<8x128xf32>
    %45 = vector.shape_cast %42 : vector<8x128xf32> to vector<1x8x128xf32>
    tpu.vector_store %arg5[%c0_20, %c0_21, %c0_22], %45 {strides = array<i32>} : memref<8x8x128xf32, #tpu.memory_space<vmem>>, vector<1x8x128xf32>,
    %c1 = arith.constant 1 : index
    %c0_23 = arith.constant 0 : index
    %c0_24 = arith.constant 0 : index
    %46 = vector.load %arg6[%c1, %c0_23, %c0_24] : memref<8x8x512xf32, #tpu.memory_space<vmem>>, vector<1x8x512xf32>
    %47 = vector.shape_cast %46 : vector<1x8x512xf32> to vector<8x512xf32>
    %48 = arith.truncf %42 : vector<8x128xf32> to vector<8x128xbf16>
    %cst_25 = arith.constant dense<0.000000e+00> : vector<8x512xf32>
    %49 = tpu.matmul %48, %1, %cst_25 {dimension_numbers = #tpu.dot_dimension_numbers<[1], [0], [0], [1], [0, 0, 1, 1], [], []>} : vector<8x128xbf16>, vector<128x512xbf16>, vector<8x512xf32> -> vector<8x512xf32>
    %50 = arith.addf %47, %49 : vector<8x512xf32>
    %51 = vector.extract_strided_slice %50 {offsets = [0, 0], sizes = [8, 128], strides = [1, 1]} : vector<8x512xf32> to vector<8x128xf32>
    %52 = arith.negf %51 : vector<8x128xf32>
    %53 = math.exp %52 : vector<8x128xf32>
    %cst_26 = arith.constant 1.000000e+00 : f32
    %54 = vector.broadcast %cst_26 : f32 to vector<8x128xf32>
    %55 = arith.addf %54, %53 : vector<8x128xf32>
    %56 = arith.divf %54, %55 : vector<8x128xf32>
    %57 = vector.extract_strided_slice %50 {offsets = [0, 128], sizes = [8, 128], strides = [1, 1]} : vector<8x512xf32> to vector<8x128xf32>
    %58 = arith.negf %57 : vector<8x128xf32>
    %59 = math.exp %58 : vector<8x128xf32>
    %cst_27 = arith.constant 1.000000e+00 : f32
    %60 = vector.broadcast %cst_27 : f32 to vector<8x128xf32>
    %61 = arith.addf %60, %59 : vector<8x128xf32>
    %62 = arith.divf %60, %61 : vector<8x128xf32>
    %63 = vector.extract_strided_slice %50 {offsets = [0, 256], sizes = [8, 128], strides = [1, 1]} : vector<8x512xf32> to vector<8x128xf32>
    %64 = math.tanh %63 : vector<8x128xf32>
    %65 = vector.extract_strided_slice %50 {offsets = [0, 384], sizes = [8, 128], strides = [1, 1]} : vector<8x512xf32> to vector<8x128xf32>
    %66 = arith.negf %65 : vector<8x128xf32>
    %67 = math.exp %66 : vector<8x128xf32>
    %cst_28 = arith.constant 1.000000e+00 : f32
    %68 = vector.broadcast %cst_28 : f32 to vector<8x128xf32>
    %69 = arith.addf %68, %67 : vector<8x128xf32>
    %70 = arith.divf %68, %69 : vector<8x128xf32>
    %71 = arith.mulf %62, %40 : vector<8x128xf32>
    %72 = arith.mulf %56, %64 : vector<8x128xf32>
    %73 = arith.addf %71, %72 : vector<8x128xf32>
    %74 = math.tanh %73 : vector<8x128xf32>
    %75 = arith.mulf %70, %74 : vector<8x128xf32>
    %c1_29 = arith.constant 1 : index
    %c0_30 = arith.constant 0 : index
    %c0_31 = arith.constant 0 : index
    %76 = vector.load %arg5[%c1_29, %c0_30, %c0_31] : memref<8x8x128xf32, #tpu.memory_space<vmem>>, vector<1x8x128xf32>
    %77 = vector.shape_cast %76 : vector<1x8x128xf32> to vector<8x128xf32>
    %78 = vector.shape_cast %75 : vector<8x128xf32> to vector<1x8x128xf32>
    tpu.vector_store %arg5[%c1_29, %c0_30, %c0_31], %78 {strides = array<i32>} : memref<8x8x128xf32, #tpu.memory_space<vmem>>, vector<1x8x128xf32>,
    %c2 = arith.constant 2 : index
    %c0_32 = arith.constant 0 : index
    %c0_33 = arith.constant 0 : index
    %79 = vector.load %arg6[%c2, %c0_32, %c0_33] : memref<8x8x512xf32, #tpu.memory_space<vmem>>, vector<1x8x512xf32>
    %80 = vector.shape_cast %79 : vector<1x8x512xf32> to vector<8x512xf32>
    %81 = arith.truncf %75 : vector<8x128xf32> to vector<8x128xbf16>
    %cst_34 = arith.constant dense<0.000000e+00> : vector<8x512xf32>
    %82 = tpu.matmul %81, %1, %cst_34 {dimension_numbers = #tpu.dot_dimension_numbers<[1], [0], [0], [1], [0, 0, 1, 1], [], []>} : vector<8x128xbf16>, vector<128x512xbf16>, vector<8x512xf32> -> vector<8x512xf32>
    %83 = arith.addf %80, %82 : vector<8x512xf32>
    %84 = vector.extract_strided_slice %83 {offsets = [0, 0], sizes = [8, 128], strides = [1, 1]} : vector<8x512xf32> to vector<8x128xf32>
    %85 = arith.negf %84 : vector<8x128xf32>
    %86 = math.exp %85 : vector<8x128xf32>
    %cst_35 = arith.constant 1.000000e+00 : f32
    %87 = vector.broadcast %cst_35 : f32 to vector<8x128xf32>
    %88 = arith.addf %87, %86 : vector<8x128xf32>
    %89 = arith.divf %87, %88 : vector<8x128xf32>
    %90 = vector.extract_strided_slice %83 {offsets = [0, 128], sizes = [8, 128], strides = [1, 1]} : vector<8x512xf32> to vector<8x128xf32>
    %91 = arith.negf %90 : vector<8x128xf32>
    %92 = math.exp %91 : vector<8x128xf32>
    %cst_36 = arith.constant 1.000000e+00 : f32
    %93 = vector.broadcast %cst_36 : f32 to vector<8x128xf32>
    %94 = arith.addf %93, %92 : vector<8x128xf32>
    %95 = arith.divf %93, %94 : vector<8x128xf32>
    %96 = vector.extract_strided_slice %83 {offsets = [0, 256], sizes = [8, 128], strides = [1, 1]} : vector<8x512xf32> to vector<8x128xf32>
    %97 = math.tanh %96 : vector<8x128xf32>
    %98 = vector.extract_strided_slice %83 {offsets = [0, 384], sizes = [8, 128], strides = [1, 1]} : vector<8x512xf32> to vector<8x128xf32>
    %99 = arith.negf %98 : vector<8x128xf32>
    %100 = math.exp %99 : vector<8x128xf32>
    %cst_37 = arith.constant 1.000000e+00 : f32
    %101 = vector.broadcast %cst_37 : f32 to vector<8x128xf32>
    %102 = arith.addf %101, %100 : vector<8x128xf32>
    %103 = arith.divf %101, %102 : vector<8x128xf32>
    %104 = arith.mulf %95, %73 : vector<8x128xf32>
    %105 = arith.mulf %89, %97 : vector<8x128xf32>
    %106 = arith.addf %104, %105 : vector<8x128xf32>
    %107 = math.tanh %106 : vector<8x128xf32>
    %108 = arith.mulf %103, %107 : vector<8x128xf32>
    %c2_38 = arith.constant 2 : index
    %c0_39 = arith.constant 0 : index
    %c0_40 = arith.constant 0 : index
    %109 = vector.load %arg5[%c2_38, %c0_39, %c0_40] : memref<8x8x128xf32, #tpu.memory_space<vmem>>, vector<1x8x128xf32>
    %110 = vector.shape_cast %109 : vector<1x8x128xf32> to vector<8x128xf32>
    %111 = vector.shape_cast %108 : vector<8x128xf32> to vector<1x8x128xf32>
    tpu.vector_store %arg5[%c2_38, %c0_39, %c0_40], %111 {strides = array<i32>} : memref<8x8x128xf32, #tpu.memory_space<vmem>>, vector<1x8x128xf32>,
    %c3 = arith.constant 3 : index
    %c0_41 = arith.constant 0 : index
    %c0_42 = arith.constant 0 : index
    %112 = vector.load %arg6[%c3, %c0_41, %c0_42] : memref<8x8x512xf32, #tpu.memory_space<vmem>>, vector<1x8x512xf32>
    %113 = vector.shape_cast %112 : vector<1x8x512xf32> to vector<8x512xf32>
    %114 = arith.truncf %108 : vector<8x128xf32> to vector<8x128xbf16>
    %cst_43 = arith.constant dense<0.000000e+00> : vector<8x512xf32>
    %115 = tpu.matmul %114, %1, %cst_43 {dimension_numbers = #tpu.dot_dimension_numbers<[1], [0], [0], [1], [0, 0, 1, 1], [], []>} : vector<8x128xbf16>, vector<128x512xbf16>, vector<8x512xf32> -> vector<8x512xf32>
    %116 = arith.addf %113, %115 : vector<8x512xf32>
    %117 = vector.extract_strided_slice %116 {offsets = [0, 0], sizes = [8, 128], strides = [1, 1]} : vector<8x512xf32> to vector<8x128xf32>
    %118 = arith.negf %117 : vector<8x128xf32>
    %119 = math.exp %118 : vector<8x128xf32>
    %cst_44 = arith.constant 1.000000e+00 : f32
    %120 = vector.broadcast %cst_44 : f32 to vector<8x128xf32>
    %121 = arith.addf %120, %119 : vector<8x128xf32>
    %122 = arith.divf %120, %121 : vector<8x128xf32>
    %123 = vector.extract_strided_slice %116 {offsets = [0, 128], sizes = [8, 128], strides = [1, 1]} : vector<8x512xf32> to vector<8x128xf32>
    %124 = arith.negf %123 : vector<8x128xf32>
    %125 = math.exp %124 : vector<8x128xf32>
    %cst_45 = arith.constant 1.000000e+00 : f32
    %126 = vector.broadcast %cst_45 : f32 to vector<8x128xf32>
    %127 = arith.addf %126, %125 : vector<8x128xf32>
    %128 = arith.divf %126, %127 : vector<8x128xf32>
    %129 = vector.extract_strided_slice %116 {offsets = [0, 256], sizes = [8, 128], strides = [1, 1]} : vector<8x512xf32> to vector<8x128xf32>
    %130 = math.tanh %129 : vector<8x128xf32>
    %131 = vector.extract_strided_slice %116 {offsets = [0, 384], sizes = [8, 128], strides = [1, 1]} : vector<8x512xf32> to vector<8x128xf32>
    %132 = arith.negf %131 : vector<8x128xf32>
    %133 = math.exp %132 : vector<8x128xf32>
    %cst_46 = arith.constant 1.000000e+00 : f32
    %134 = vector.broadcast %cst_46 : f32 to vector<8x128xf32>
    %135 = arith.addf %134, %133 : vector<8x128xf32>
    %136 = arith.divf %134, %135 : vector<8x128xf32>
    %137 = arith.mulf %128, %106 : vector<8x128xf32>
    %138 = arith.mulf %122, %130 : vector<8x128xf32>
    %139 = arith.addf %137, %138 : vector<8x128xf32>
    %140 = math.tanh %139 : vector<8x128xf32>
    %141 = arith.mulf %136, %140 : vector<8x128xf32>
    %c3_47 = arith.constant 3 : index
    %c0_48 = arith.constant 0 : index
    %c0_49 = arith.constant 0 : index
    %142 = vector.load %arg5[%c3_47, %c0_48, %c0_49] : memref<8x8x128xf32, #tpu.memory_space<vmem>>, vector<1x8x128xf32>
    %143 = vector.shape_cast %142 : vector<1x8x128xf32> to vector<8x128xf32>
    %144 = vector.shape_cast %141 : vector<8x128xf32> to vector<1x8x128xf32>
    tpu.vector_store %arg5[%c3_47, %c0_48, %c0_49], %144 {strides = array<i32>} : memref<8x8x128xf32, #tpu.memory_space<vmem>>, vector<1x8x128xf32>,
    %c4 = arith.constant 4 : index
    %c0_50 = arith.constant 0 : index
    %c0_51 = arith.constant 0 : index
    %145 = vector.load %arg6[%c4, %c0_50, %c0_51] : memref<8x8x512xf32, #tpu.memory_space<vmem>>, vector<1x8x512xf32>
    %146 = vector.shape_cast %145 : vector<1x8x512xf32> to vector<8x512xf32>
    %147 = arith.truncf %141 : vector<8x128xf32> to vector<8x128xbf16>
    %cst_52 = arith.constant dense<0.000000e+00> : vector<8x512xf32>
    %148 = tpu.matmul %147, %1, %cst_52 {dimension_numbers = #tpu.dot_dimension_numbers<[1], [0], [0], [1], [0, 0, 1, 1], [], []>} : vector<8x128xbf16>, vector<128x512xbf16>, vector<8x512xf32> -> vector<8x512xf32>
    %149 = arith.addf %146, %148 : vector<8x512xf32>
    %150 = vector.extract_strided_slice %149 {offsets = [0, 0], sizes = [8, 128], strides = [1, 1]} : vector<8x512xf32> to vector<8x128xf32>
    %151 = arith.negf %150 : vector<8x128xf32>
    %152 = math.exp %151 : vector<8x128xf32>
    %cst_53 = arith.constant 1.000000e+00 : f32
    %153 = vector.broadcast %cst_53 : f32 to vector<8x128xf32>
    %154 = arith.addf %153, %152 : vector<8x128xf32>
    %155 = arith.divf %153, %154 : vector<8x128xf32>
    %156 = vector.extract_strided_slice %149 {offsets = [0, 128], sizes = [8, 128], strides = [1, 1]} : vector<8x512xf32> to vector<8x128xf32>
    %157 = arith.negf %156 : vector<8x128xf32>
    %158 = math.exp %157 : vector<8x128xf32>
    %cst_54 = arith.constant 1.000000e+00 : f32
    %159 = vector.broadcast %cst_54 : f32 to vector<8x128xf32>
    %160 = arith.addf %159, %158 : vector<8x128xf32>
    %161 = arith.divf %159, %160 : vector<8x128xf32>
    %162 = vector.extract_strided_slice %149 {offsets = [0, 256], sizes = [8, 128], strides = [1, 1]} : vector<8x512xf32> to vector<8x128xf32>
    %163 = math.tanh %162 : vector<8x128xf32>
    %164 = vector.extract_strided_slice %149 {offsets = [0, 384], sizes = [8, 128], strides = [1, 1]} : vector<8x512xf32> to vector<8x128xf32>
    %165 = arith.negf %164 : vector<8x128xf32>
    %166 = math.exp %165 : vector<8x128xf32>
    %cst_55 = arith.constant 1.000000e+00 : f32
    %167 = vector.broadcast %cst_55 : f32 to vector<8x128xf32>
    %168 = arith.addf %167, %166 : vector<8x128xf32>
    %169 = arith.divf %167, %168 : vector<8x128xf32>
    %170 = arith.mulf %161, %139 : vector<8x128xf32>
    %171 = arith.mulf %155, %163 : vector<8x128xf32>
    %172 = arith.addf %170, %171 : vector<8x128xf32>
    %173 = math.tanh %172 : vector<8x128xf32>
    %174 = arith.mulf %169, %173 : vector<8x128xf32>
    %c4_56 = arith.constant 4 : index
    %c0_57 = arith.constant 0 : index
    %c0_58 = arith.constant 0 : index
    %175 = vector.load %arg5[%c4_56, %c0_57, %c0_58] : memref<8x8x128xf32, #tpu.memory_space<vmem>>, vector<1x8x128xf32>
    %176 = vector.shape_cast %175 : vector<1x8x128xf32> to vector<8x128xf32>
    %177 = vector.shape_cast %174 : vector<8x128xf32> to vector<1x8x128xf32>
    tpu.vector_store %arg5[%c4_56, %c0_57, %c0_58], %177 {strides = array<i32>} : memref<8x8x128xf32, #tpu.memory_space<vmem>>, vector<1x8x128xf32>,
    %c5 = arith.constant 5 : index
    %c0_59 = arith.constant 0 : index
    %c0_60 = arith.constant 0 : index
    %178 = vector.load %arg6[%c5, %c0_59, %c0_60] : memref<8x8x512xf32, #tpu.memory_space<vmem>>, vector<1x8x512xf32>
    %179 = vector.shape_cast %178 : vector<1x8x512xf32> to vector<8x512xf32>
    %180 = arith.truncf %174 : vector<8x128xf32> to vector<8x128xbf16>
    %cst_61 = arith.constant dense<0.000000e+00> : vector<8x512xf32>
    %181 = tpu.matmul %180, %1, %cst_61 {dimension_numbers = #tpu.dot_dimension_numbers<[1], [0], [0], [1], [0, 0, 1, 1], [], []>} : vector<8x128xbf16>, vector<128x512xbf16>, vector<8x512xf32> -> vector<8x512xf32>
    %182 = arith.addf %179, %181 : vector<8x512xf32>
    %183 = vector.extract_strided_slice %182 {offsets = [0, 0], sizes = [8, 128], strides = [1, 1]} : vector<8x512xf32> to vector<8x128xf32>
    %184 = arith.negf %183 : vector<8x128xf32>
    %185 = math.exp %184 : vector<8x128xf32>
    %cst_62 = arith.constant 1.000000e+00 : f32
    %186 = vector.broadcast %cst_62 : f32 to vector<8x128xf32>
    %187 = arith.addf %186, %185 : vector<8x128xf32>
    %188 = arith.divf %186, %187 : vector<8x128xf32>
    %189 = vector.extract_strided_slice %182 {offsets = [0, 128], sizes = [8, 128], strides = [1, 1]} : vector<8x512xf32> to vector<8x128xf32>
    %190 = arith.negf %189 : vector<8x128xf32>
    %191 = math.exp %190 : vector<8x128xf32>
    %cst_63 = arith.constant 1.000000e+00 : f32
    %192 = vector.broadcast %cst_63 : f32 to vector<8x128xf32>
    %193 = arith.addf %192, %191 : vector<8x128xf32>
    %194 = arith.divf %192, %193 : vector<8x128xf32>
    %195 = vector.extract_strided_slice %182 {offsets = [0, 256], sizes = [8, 128], strides = [1, 1]} : vector<8x512xf32> to vector<8x128xf32>
    %196 = math.tanh %195 : vector<8x128xf32>
    %197 = vector.extract_strided_slice %182 {offsets = [0, 384], sizes = [8, 128], strides = [1, 1]} : vector<8x512xf32> to vector<8x128xf32>
    %198 = arith.negf %197 : vector<8x128xf32>
    %199 = math.exp %198 : vector<8x128xf32>
    %cst_64 = arith.constant 1.000000e+00 : f32
    %200 = vector.broadcast %cst_64 : f32 to vector<8x128xf32>
    %201 = arith.addf %200, %199 : vector<8x128xf32>
    %202 = arith.divf %200, %201 : vector<8x128xf32>
    %203 = arith.mulf %194, %172 : vector<8x128xf32>
    %204 = arith.mulf %188, %196 : vector<8x128xf32>
    %205 = arith.addf %203, %204 : vector<8x128xf32>
    %206 = math.tanh %205 : vector<8x128xf32>
    %207 = arith.mulf %202, %206 : vector<8x128xf32>
    %c5_65 = arith.constant 5 : index
    %c0_66 = arith.constant 0 : index
    %c0_67 = arith.constant 0 : index
    %208 = vector.load %arg5[%c5_65, %c0_66, %c0_67] : memref<8x8x128xf32, #tpu.memory_space<vmem>>, vector<1x8x128xf32>
    %209 = vector.shape_cast %208 : vector<1x8x128xf32> to vector<8x128xf32>
    %210 = vector.shape_cast %207 : vector<8x128xf32> to vector<1x8x128xf32>
    tpu.vector_store %arg5[%c5_65, %c0_66, %c0_67], %210 {strides = array<i32>} : memref<8x8x128xf32, #tpu.memory_space<vmem>>, vector<1x8x128xf32>,
    %c6 = arith.constant 6 : index
    %c0_68 = arith.constant 0 : index
    %c0_69 = arith.constant 0 : index
    %211 = vector.load %arg6[%c6, %c0_68, %c0_69] : memref<8x8x512xf32, #tpu.memory_space<vmem>>, vector<1x8x512xf32>
    %212 = vector.shape_cast %211 : vector<1x8x512xf32> to vector<8x512xf32>
    %213 = arith.truncf %207 : vector<8x128xf32> to vector<8x128xbf16>
    %cst_70 = arith.constant dense<0.000000e+00> : vector<8x512xf32>
    %214 = tpu.matmul %213, %1, %cst_70 {dimension_numbers = #tpu.dot_dimension_numbers<[1], [0], [0], [1], [0, 0, 1, 1], [], []>} : vector<8x128xbf16>, vector<128x512xbf16>, vector<8x512xf32> -> vector<8x512xf32>
    %215 = arith.addf %212, %214 : vector<8x512xf32>
    %216 = vector.extract_strided_slice %215 {offsets = [0, 0], sizes = [8, 128], strides = [1, 1]} : vector<8x512xf32> to vector<8x128xf32>
    %217 = arith.negf %216 : vector<8x128xf32>
    %218 = math.exp %217 : vector<8x128xf32>
    %cst_71 = arith.constant 1.000000e+00 : f32
    %219 = vector.broadcast %cst_71 : f32 to vector<8x128xf32>
    %220 = arith.addf %219, %218 : vector<8x128xf32>
    %221 = arith.divf %219, %220 : vector<8x128xf32>
    %222 = vector.extract_strided_slice %215 {offsets = [0, 128], sizes = [8, 128], strides = [1, 1]} : vector<8x512xf32> to vector<8x128xf32>
    %223 = arith.negf %222 : vector<8x128xf32>
    %224 = math.exp %223 : vector<8x128xf32>
    %cst_72 = arith.constant 1.000000e+00 : f32
    %225 = vector.broadcast %cst_72 : f32 to vector<8x128xf32>
    %226 = arith.addf %225, %224 : vector<8x128xf32>
    %227 = arith.divf %225, %226 : vector<8x128xf32>
    %228 = vector.extract_strided_slice %215 {offsets = [0, 256], sizes = [8, 128], strides = [1, 1]} : vector<8x512xf32> to vector<8x128xf32>
    %229 = math.tanh %228 : vector<8x128xf32>
    %230 = vector.extract_strided_slice %215 {offsets = [0, 384], sizes = [8, 128], strides = [1, 1]} : vector<8x512xf32> to vector<8x128xf32>
    %231 = arith.negf %230 : vector<8x128xf32>
    %232 = math.exp %231 : vector<8x128xf32>
    %cst_73 = arith.constant 1.000000e+00 : f32
    %233 = vector.broadcast %cst_73 : f32 to vector<8x128xf32>
    %234 = arith.addf %233, %232 : vector<8x128xf32>
    %235 = arith.divf %233, %234 : vector<8x128xf32>
    %236 = arith.mulf %227, %205 : vector<8x128xf32>
    %237 = arith.mulf %221, %229 : vector<8x128xf32>
    %238 = arith.addf %236, %237 : vector<8x128xf32>
    %239 = math.tanh %238 : vector<8x128xf32>
    %240 = arith.mulf %235, %239 : vector<8x128xf32>
    %c6_74 = arith.constant 6 : index
    %c0_75 = arith.constant 0 : index
    %c0_76 = arith.constant 0 : index
    %241 = vector.load %arg5[%c6_74, %c0_75, %c0_76] : memref<8x8x128xf32, #tpu.memory_space<vmem>>, vector<1x8x128xf32>
    %242 = vector.shape_cast %241 : vector<1x8x128xf32> to vector<8x128xf32>
    %243 = vector.shape_cast %240 : vector<8x128xf32> to vector<1x8x128xf32>
    tpu.vector_store %arg5[%c6_74, %c0_75, %c0_76], %243 {strides = array<i32>} : memref<8x8x128xf32, #tpu.memory_space<vmem>>, vector<1x8x128xf32>,
    %c7 = arith.constant 7 : index
    %c0_77 = arith.constant 0 : index
    %c0_78 = arith.constant 0 : index
    %244 = vector.load %arg6[%c7, %c0_77, %c0_78] : memref<8x8x512xf32, #tpu.memory_space<vmem>>, vector<1x8x512xf32>
    %245 = vector.shape_cast %244 : vector<1x8x512xf32> to vector<8x512xf32>
    %246 = arith.truncf %240 : vector<8x128xf32> to vector<8x128xbf16>
    %cst_79 = arith.constant dense<0.000000e+00> : vector<8x512xf32>
    %247 = tpu.matmul %246, %1, %cst_79 {dimension_numbers = #tpu.dot_dimension_numbers<[1], [0], [0], [1], [0, 0, 1, 1], [], []>} : vector<8x128xbf16>, vector<128x512xbf16>, vector<8x512xf32> -> vector<8x512xf32>
    %248 = arith.addf %245, %247 : vector<8x512xf32>
    %249 = vector.extract_strided_slice %248 {offsets = [0, 0], sizes = [8, 128], strides = [1, 1]} : vector<8x512xf32> to vector<8x128xf32>
    %250 = arith.negf %249 : vector<8x128xf32>
    %251 = math.exp %250 : vector<8x128xf32>
    %cst_80 = arith.constant 1.000000e+00 : f32
    %252 = vector.broadcast %cst_80 : f32 to vector<8x128xf32>
    %253 = arith.addf %252, %251 : vector<8x128xf32>
    %254 = arith.divf %252, %253 : vector<8x128xf32>
    %255 = vector.extract_strided_slice %248 {offsets = [0, 128], sizes = [8, 128], strides = [1, 1]} : vector<8x512xf32> to vector<8x128xf32>
    %256 = arith.negf %255 : vector<8x128xf32>
    %257 = math.exp %256 : vector<8x128xf32>
    %cst_81 = arith.constant 1.000000e+00 : f32
    %258 = vector.broadcast %cst_81 : f32 to vector<8x128xf32>
    %259 = arith.addf %258, %257 : vector<8x128xf32>
    %260 = arith.divf %258, %259 : vector<8x128xf32>
    %261 = vector.extract_strided_slice %248 {offsets = [0, 256], sizes = [8, 128], strides = [1, 1]} : vector<8x512xf32> to vector<8x128xf32>
    %262 = math.tanh %261 : vector<8x128xf32>
    %263 = vector.extract_strided_slice %248 {offsets = [0, 384], sizes = [8, 128], strides = [1, 1]} : vector<8x512xf32> to vector<8x128xf32>
    %264 = arith.negf %263 : vector<8x128xf32>
    %265 = math.exp %264 : vector<8x128xf32>
    %cst_82 = arith.constant 1.000000e+00 : f32
    %266 = vector.broadcast %cst_82 : f32 to vector<8x128xf32>
    %267 = arith.addf %266, %265 : vector<8x128xf32>
    %268 = arith.divf %266, %267 : vector<8x128xf32>
    %269 = arith.mulf %260, %238 : vector<8x128xf32>
    %270 = arith.mulf %254, %262 : vector<8x128xf32>
    %271 = arith.addf %269, %270 : vector<8x128xf32>
    %272 = math.tanh %271 : vector<8x128xf32>
    %273 = arith.mulf %268, %272 : vector<8x128xf32>
    %c7_83 = arith.constant 7 : index
    %c0_84 = arith.constant 0 : index
    %c0_85 = arith.constant 0 : index
    %274 = vector.load %arg5[%c7_83, %c0_84, %c0_85] : memref<8x8x128xf32, #tpu.memory_space<vmem>>, vector<1x8x128xf32>
    %275 = vector.shape_cast %274 : vector<1x8x128xf32> to vector<8x128xf32>
    %276 = vector.shape_cast %273 : vector<8x128xf32> to vector<1x8x128xf32>
    tpu.vector_store %arg5[%c7_83, %c0_84, %c0_85], %276 {strides = array<i32>} : memref<8x8x128xf32, #tpu.memory_space<vmem>>, vector<1x8x128xf32>,
    return
  }
  func.func @transform_0(%arg0: i32) -> (i32, i32, i32) {
    %c0_i32 = arith.constant 0 : i32
    %c0_i32_0 = arith.constant 0 : i32
    %c0_i32_1 = arith.constant 0 : i32
    return %c0_i32, %arg0, %c0_i32_0 : i32, i32, i32
  }
  func.func @transform_1(%arg0: i32) -> (i32, i32) {
    %c0_i32 = arith.constant 0 : i32
    %c0_i32_0 = arith.constant 0 : i32
    %c0_i32_1 = arith.constant 0 : i32
    return %c0_i32, %c0_i32_0 : i32, i32
  }
  func.func @transform_2(%arg0: i32) -> (i32, i32) {
    %c0_i32 = arith.constant 0 : i32
    %c0_i32_0 = arith.constant 0 : i32
    %c0_i32_1 = arith.constant 0 : i32
    return %c0_i32, %c0_i32_0 : i32, i32
  }
  func.func @transform_3(%arg0: i32) -> (i32, i32) {
    %c0_i32 = arith.constant 0 : i32
    %c0_i32_0 = arith.constant 0 : i32
    %c0_i32_1 = arith.constant 0 : i32
    return %c0_i32, %c0_i32_0 : i32, i32
  }
  func.func @transform_4(%arg0: i32) -> (i32, i32, i32) {
    %c0_i32 = arith.constant 0 : i32
    %c0_i32_0 = arith.constant 0 : i32
    %c0_i32_1 = arith.constant 0 : i32
    return %c0_i32, %arg0, %c0_i32_0 : i32, i32, i32
  }
}

</mosaic_0001>

<bundles_post_ra>
// kernel: tpu_custom_call.1
= control target key start
LH: loop header
LB: loop body
LE: loop exit
PB: predicated region body
PF: predicated region fallthrough
CT: control target
= control target key end

     0   :  { %9 = vsyncpa [#allocation4], 0  ;;  %s2411_s0 = inlined_call_operand.vmem [shape: f32[8,8,2], index: 0, kind: input, shape index: {}]   ;;  %s2412_s1 = inlined_call_operand.vmem [shape: bf16[2,512], index: 1, kind: input, shape index: {}]   ;;  %s2413_s2 = inlined_call_operand.hbm [shape: bf16[128,512], index: 2, kind: input, shape index: {}]   ;;  %s2414_s3 = inlined_call_operand.vmem [shape: f32[1,512], index: 3, kind: input, shape index: {}]   ;;  %s2415_s4 = inlined_call_operand.hbm [shape: f32[8,8,128], index: 4, kind: output, shape index: {}]  }
   0x1   :  { %10 = vsyncpa [#allocation5], 0  ;;  %s1778_s15 = smov [#allocation3]   ;;  %s1730_s19 = scalar_lea.hbm %s2413_s2, 4096 }
   0x2   :  { %s20_s16 = sshll.u32 %s1778_s15, 4  ;;  %p1731_p0 = scmp.ne.s32.totalorder %s2413_s2, %s1730_s19  ;;  %s21_s16 = int_to_ptr.vmem [resolvable:$true] %s20_s16 }
   0x3   :  { %p1734_p1 = scmp.lt.u32.totalorder %s1730_s19, %s2413_s2 }
   0x5   :  { %p1736_p2 = pnand %p1734_p1, %p1731_p0 }
   0x7   :  { %1739 = shalt.err (!%p1736_p2)
}
   0x8   :  { %s1740_s24 = scalar_lea.vmem %s21_s16, 4096  ;;  %p1745_p4 = scmp.lt.s32.totalorder %s21_s16, %s21_s16 }
   0x9   :  { %p1741_p3 = scmp.ne.s32.totalorder %s21_s16, %s1740_s24  ;;  %p1746_p5 = scmp.lt.s32.totalorder %s1740_s24, %s1740_s24 }
   0xb   :  { %p1747_p6 = por %p1746_p5, %p1745_p4 }
   0xd   :  { %p1748_p7 = pnand %p1747_p6, %p1741_p3 }
   0xf   :  { %1751 = shalt.err (!%p1748_p7)
}
  0x10   :  { %s1779_s25 = smov 256   ;;  %s1780_s26 = smov 16  }
  0x11   :  { %26 = dma.hbm_to_vmem [thread:$0]  %s2413_s2, 4096, %s21_s16, [#allocation4], %s1779_s25, %s1779_s25, %s1780_s26  }
  0x12   :  { %1774 = dma.done.wait [#allocation4], 4096  }
  0x13   :  { %1775 = vsyncadd [#allocation4], 4294963200  ;;  %v80_v0 = vlaneseq  ;;  %v1781_v1 = vmov 1966171168   ;;  %v2416_v3 = vmov 0   ;;  %vm138_vm0 = vcmask 1040384  }
  0x14   :  { %v110_v2 = vunpack.c.l.s4 %v1781_v1  ;;  %183 = vmatprep.mubr.bf16.mxu0 %v2416_v3  ;;  %256 = vmatprep.mubr.bf16.mxu1 %v2416_v3  ;;  %v1447_v7 = vld.sshfl [vmem:[%s2412_s1] sm:$0x33 pattern:$0x75316420]  ;;  %v68_v11 = vld [vmem:[%s2411_s0 + $0x8] sm:$0xff]  ;;  %vm125_vm1 = vcmask 15360  }
  0x15   :  { %v1825_v4 = vshrl.u32 %v80_v0, 7  ;;  %v108_v8 = vcombine.high %v1447_v7, %v1447_v7  ;;  %v67_v10 = vld [vmem:[%s2411_s0] sm:$0xff]  ;;  %v1842_v19 = vld [vmem:[#allocation3 + $0xc] ss:$16 sps:$4 sm:$0xff]   ;;  %v1850_v22 = vld [vmem:[#allocation3 + $0x8] ss:$16 sps:$4 sm:$0xff]  }
  0x16   :  { %v111_v5 = vunpack.c.0.s8 %v110_v2  ;;  %v1838_v15 = vld [vmem:[#allocation3 + $0x4] ss:$16 sps:$4 sm:$0xff]   ;;  %v75_v18 = vpack.c.bf16 %v68_v11, %v67_v10  ;;  %v1844_v20 = vld [vmem:[#allocation3] ss:$16 sps:$4 sm:$0xff]   ;;  %v1856_v24 = vld [vmem:[#allocation3 + $0x2c] ss:$16 sps:$4 sm:$0xff]  }
  0x17   :  { %v1848_v21 = vld [vmem:[#allocation3 + $0x24] ss:$16 sps:$4 sm:$0xff]   ;;  %v1854_v23 = vld [vmem:[#allocation3 + $0x20] ss:$16 sps:$4 sm:$0xff]   ;;  %v70_v26 = vld [vmem:[%s2411_s0 + $0x18] sm:$0xff]  ;;  %v82_v59 = vsub.s32 0, %v1825_v4 }
  0x18   :  { %v114_v6 = vsub.s32 %v111_v5, %v1825_v4  ;;  %v69_v25 = vld [vmem:[%s2411_s0 + $0x10] sm:$0xff]  ;;  %v1871_v28 = vld [vmem:[#allocation3 + $0x28] ss:$16 sps:$4 sm:$0xff]   ;;  %v1875_v30 = vld [vmem:[#allocation3 + $0x4c] ss:$16 sps:$4 sm:$0xff]   ;;  %v90_v60 = vsub.s32 2, %v1825_v4 }
  0x19   :  { %v1868_v27 = vld [vmem:[#allocation3 + $0x44] ss:$16 sps:$4 sm:$0xff]   ;;  %v76_v29 = vpack.c.bf16 %v70_v26, %v69_v25  ;;  %v1878_v31 = vld [vmem:[#allocation3 + $0x40] ss:$16 sps:$4 sm:$0xff]   ;;  %v1884_v33 = vld [vmem:[#allocation3 + $0x48] ss:$16 sps:$4 sm:$0xff]  }
  0x1a   :  { %v115_v9 = vrot.slane %v1447_v7, %v114_v6  ;;  %v122_v12 = vrot.slane %v108_v8, %v114_v6  ;;  %v1881_v32 = vld [vmem:[#allocation3 + $0x64] ss:$16 sps:$4 sm:$0xff]   ;;  %v1888_v34 = vld [vmem:[#allocation3 + $0x6c] ss:$16 sps:$4 sm:$0xff]   ;;  %v1891_v35 = vld [vmem:[#allocation3 + $0x60] ss:$16 sps:$4 sm:$0xff]  }
  0x1b   :  { %v71_v36 = vld [vmem:[%s2411_s0 + $0x20] sm:$0xff]  ;;  %v72_v37 = vld [vmem:[%s2411_s0 + $0x28] sm:$0xff]  ;;  %v73_v47 = vld [vmem:[%s2411_s0 + $0x30] sm:$0xff]  ;;  %v86_v62 = vsub.s32 1, %v1825_v4  ;;  %v94_v63 = vsub.s32 3, %v1825_v4 }
  0x1c   :  { %v140_v13 = vsel %vm138_vm0, %v115_v9, 0  ;;  %v123_v14 = vcombine.high %v115_v9, %v115_v9  ;;  %1448 = vmatprep.subr.msk.bf16.mxu0 %vm138_vm0, %v122_v12  ;;  %v124_v16 = vcombine.high %v122_v12, %v122_v12  ;;  %v1902_v38 = vld [vmem:[#allocation3 + $0x84] ss:$16 sps:$4 sm:$0xff]   ;;  %v1905_v39 = vld [vmem:[#allocation3 + $0x68] ss:$16 sps:$4 sm:$0xff]   ;;  %v77_v40 = vpack.c.bf16 %v72_v37, %v71_v36 }
  0x1d   :  { %152 = vmatpush1.bf16.msra.mxu0 %v140_v13  ;;  %v1909_v41 = vld [vmem:[#allocation3 + $0x8c] ss:$16 sps:$4 sm:$0xff]   ;;  %v1912_v42 = vld [vmem:[#allocation3 + $0x80] ss:$16 sps:$4 sm:$0xff]   ;;  %v1915_v43 = vld [vmem:[#allocation3 + $0xa4] ss:$16 sps:$4 sm:$0xff]  }
  0x1e   :  { %v146_v17 = vsel %vm138_vm0, %v123_v14, 0  ;;  %1453 = vmatprep.subr.msk.bf16.mxu1 %vm138_vm0, %v124_v16  ;;  %493 = vmatprep.subr.bf16.mxu0 %v1838_v15  ;;  %v1918_v44 = vld [vmem:[#allocation3 + $0x88] ss:$16 sps:$4 sm:$0xff]   ;;  %v1922_v45 = vld [vmem:[#allocation3 + $0xac] ss:$16 sps:$4 sm:$0xff]  }
  0x1f   :  { %225 = vmatpush1.bf16.msra.mxu1 %v146_v17  ;;  %v1925_v46 = vld [vmem:[#allocation3 + $0xa0] ss:$16 sps:$4 sm:$0xff]   ;;  %v74_v48 = vld [vmem:[%s2411_s0 + $0x38] sm:$0xff]  ;;  %v1936_v49 = vld [vmem:[#allocation3 + $0xc4] ss:$16 sps:$4 sm:$0xff]  }
  0x20   :  { %1449 = vmatmul.mubr.msk.bf16.vlgmr.msra.gmra.mrb[0].mxu0 %vm125_vm1, %v75_v18  ;;  %534 = vmatprep.subr.bf16.mxu1 %v1842_v19  ;;  %v1939_v50 = vld [vmem:[#allocation3 + $0xa8] ss:$16 sps:$4 sm:$0xff]   ;;  %v78_v51 = vpack.c.bf16 %v74_v48, %v73_v47  ;;  %v1943_v52 = vld [vmem:[#allocation3 + $0xcc] ss:$16 sps:$4 sm:$0xff]   ;;  %v1946_v53 = vld [vmem:[#allocation3 + $0xc0] ss:$16 sps:$4 sm:$0xff]  }
  0x21   :  { %494 = vmatpush1.bf16.msra.mxu0 %v1844_v20  ;;  %193 = vmatprep.mubr.bf16.mxu0 %v2416_v3  ;;  %v1949_v54 = vld [vmem:[#allocation3 + $0xe4] ss:$16 sps:$4 sm:$0xff]   ;;  %v1952_v55 = vld [vmem:[#allocation3 + $0xc8] ss:$16 sps:$4 sm:$0xff]   ;;  %v1956_v56 = vld [vmem:[#allocation3 + $0xec] ss:$16 sps:$4 sm:$0xff]  }
  0x22   :  { %1454 = vmatmul.mubr.msk.bf16.vlgmr.msra.gmra.mrb[0].mxu1 %vm125_vm1, %v75_v18  ;;  %495 = vmatprep.subr.bf16.mxu0 %v1848_v21  ;;  %v1959_v57 = vld [vmem:[#allocation3 + $0xe0] ss:$16 sps:$4 sm:$0xff]   ;;  %v1965_v58 = vld [vmem:[#allocation3 + $0xe8] ss:$16 sps:$4 sm:$0xff]  }
  0x23   :  { %535 = vmatpush1.bf16.msra.mxu1 %v1850_v22  ;;  %266 = vmatprep.mubr.bf16.mxu1 %v2416_v3  ;;  %v66_v61 = vld [vmem:[%s2414_s3] sm:$0xf]  ;;  %s1783_s3 = smov [#allocation6]  }
  0x24   :  { %536 = vmatprep.subr.bf16.mxu1 %v1856_v24  ;;  %v2018_v1 = vrot.slane %v66_v61, %v82_v59  ;;  %v2022_v5 = vrot.slane %v66_v61, %v90_v60  ;;  %v87_v6 = vrot.slane %v66_v61, %v86_v62  ;;  %v2024_v9 = vrot.slane %v66_v61, %v94_v63  ;;  %s1435_s20 = sshll.u32 %s1783_s3, 4  ;;  %s1436_s20 = int_to_ptr.vmem [resolvable:$true] %s1435_s20 }
  0x25   :  { %496 = vmatpush1.bf16.msra.mxu0 %v1854_v23  ;;  %s1752_s21 = scalar_lea.vmem %s1436_s20, 1024  ;;  %p1757_p9 = scmp.lt.s32.totalorder %s1436_s20, %s1436_s20 }
  0x26   :  { %497 = vmatprep.subr.bf16.mxu0 %v1868_v27  ;;  %p1753_p8 = scmp.ne.s32.totalorder %s1436_s20, %s1752_s21  ;;  %p1758_p10 = scmp.lt.s32.totalorder %s1752_s21, %s1752_s21 }
  0x27   :  { %537 = vmatpush1.bf16.msra.mxu1 %v1871_v28 }
  0x28   :  { %1450 = vmatmul.mubr.msk.bf16.gmra.mrb[4].mxu0 %vm125_vm1, %v76_v29  ;;  %538 = vmatprep.subr.bf16.mxu1 %v1875_v30  ;;  %p1759_p11 = por %p1758_p10, %p1757_p9 }
  0x29   :  { %498 = vmatpush1.bf16.msra.mxu0 %v1878_v31  ;;  %203 = vmatprep.mubr.bf16.mxu0 %v2416_v3 }
  0x2a   :  { %1455 = vmatmul.mubr.msk.bf16.gmra.mrb[4].mxu1 %vm125_vm1, %v76_v29  ;;  %499 = vmatprep.subr.bf16.mxu0 %v1881_v32  ;;  %p1760_p12 = pnand %p1759_p11, %p1753_p8 }
  0x2b   :  { %539 = vmatpush1.bf16.msra.mxu1 %v1884_v33  ;;  %276 = vmatprep.mubr.bf16.mxu1 %v2416_v3 }
  0x2c   :  { %540 = vmatprep.subr.bf16.mxu1 %v1888_v34 }
  0x2d   :  { %500 = vmatpush1.bf16.msra.mxu0 %v1891_v35 }
  0x2e   :  { %501 = vmatprep.subr.bf16.mxu0 %v1902_v38 }
  0x2f   :  { %541 = vmatpush1.bf16.msra.mxu1 %v1905_v39 }
  0x30   :  { %1451 = vmatmul.mubr.msk.bf16.gmra.mrb[8].mxu0 %vm125_vm1, %v77_v40  ;;  %542 = vmatprep.subr.bf16.mxu1 %v1909_v41 }
  0x31   :  { %502 = vmatpush1.bf16.msra.mxu0 %v1912_v42  ;;  %213 = vmatprep.mubr.bf16.mxu0 %v2416_v3 }
  0x32   :  { %1456 = vmatmul.mubr.msk.bf16.gmra.mrb[8].mxu1 %vm125_vm1, %v77_v40  ;;  %503 = vmatprep.subr.bf16.mxu0 %v1915_v43 }
  0x33   :  { %543 = vmatpush1.bf16.msra.mxu1 %v1918_v44  ;;  %286 = vmatprep.mubr.bf16.mxu1 %v2416_v3 }
  0x34   :  { %544 = vmatprep.subr.bf16.mxu1 %v1922_v45 }
  0x35   :  { %504 = vmatpush1.bf16.msra.mxu0 %v1925_v46 }
  0x36   :  { %505 = vmatprep.subr.bf16.mxu0 %v1936_v49 }
  0x37   :  { %545 = vmatpush1.bf16.msra.mxu1 %v1939_v50 }
  0x38   :  { %1452 = vmatmul.mubr.msk.bf16.gmra.mrb[12].mxu0 %vm125_vm1, %v78_v51  ;;  %546 = vmatprep.subr.bf16.mxu1 %v1943_v52 }
  0x39   :  { %506 = vmatpush1.bf16.msra.mxu0 %v1946_v53  ;;  %525 = vmatprep.mubr.bf16.mxu0 %v2416_v3 }
  0x3a   :  { %1457 = vmatmul.mubr.msk.bf16.gmra.mrb[12].mxu1 %vm125_vm1, %v78_v51  ;;  %507 = vmatprep.subr.bf16.mxu0 %v1949_v54 }
  0x3b   :  { %547 = vmatpush1.bf16.msra.mxu1 %v1952_v55  ;;  %566 = vmatprep.mubr.bf16.mxu1 %v2416_v3 }
  0x3c   :  { %548 = vmatprep.subr.bf16.mxu1 %v1956_v56 }
  0x3d   :  { %508 = vmatpush1.bf16.msra.mxu0 %v1959_v57 }
  0x3e   :  { %610 = vmatprep.subr.bf16.mxu0 %v1838_v15 }
  0x3f   :  { %549 = vmatpush1.bf16.msra.mxu1 %v1965_v58 }
  0x40   :  { %526 = vmatmul.mubr.bf16.vlgmr.msra.gmra.mrb[16].mxu0 %v2416_v3  ;;  %651 = vmatprep.subr.bf16.mxu1 %v1842_v19 }
  0x41   :  { %611 = vmatpush1.bf16.msra.mxu0 %v1844_v20  ;;  %642 = vmatprep.mubr.bf16.mxu0 %v2416_v3 }
  0x42   :  { %567 = vmatmul.mubr.bf16.vlgmr.msra.gmra.mrb[16].mxu1 %v2416_v3  ;;  %612 = vmatprep.subr.bf16.mxu0 %v1848_v21 }
  0x43   :  { %652 = vmatpush1.bf16.msra.mxu1 %v1850_v22  ;;  %683 = vmatprep.mubr.bf16.mxu1 %v2416_v3 }
  0x44   :  { %653 = vmatprep.subr.bf16.mxu1 %v1856_v24 }
  0x45   :  { %613 = vmatpush1.bf16.msra.mxu0 %v1854_v23 }
  0x46   :  { %614 = vmatprep.subr.bf16.mxu0 %v1868_v27 }
  0x47   :  { %654 = vmatpush1.bf16.msra.mxu1 %v1871_v28 }
  0x48   :  { %655 = vmatprep.subr.bf16.mxu1 %v1875_v30 }
  0x49   :  { %615 = vmatpush1.bf16.msra.mxu0 %v1878_v31 }
  0x4a   :  { %616 = vmatprep.subr.bf16.mxu0 %v1881_v32 }
  0x4b   :  { %656 = vmatpush1.bf16.msra.mxu1 %v1884_v33 }
  0x4c   :  { %657 = vmatprep.subr.bf16.mxu1 %v1888_v34 }
  0x4d   :  { %617 = vmatpush1.bf16.msra.mxu0 %v1891_v35 }
  0x4e   :  { %618 = vmatprep.subr.bf16.mxu0 %v1902_v38 }
  0x4f   :  { %658 = vmatpush1.bf16.msra.mxu1 %v1905_v39 }
  0x50   :  { %659 = vmatprep.subr.bf16.mxu1 %v1909_v41 }
  0x51   :  { %619 = vmatpush1.bf16.msra.mxu0 %v1912_v42 }
  0x52   :  { %620 = vmatprep.subr.bf16.mxu0 %v1915_v43 }
  0x53   :  { %660 = vmatpush1.bf16.msra.mxu1 %v1918_v44 }
  0x54   :  { %661 = vmatprep.subr.bf16.mxu1 %v1922_v45 }
  0x55   :  { %621 = vmatpush1.bf16.msra.mxu0 %v1925_v46 }
  0x56   :  { %622 = vmatprep.subr.bf16.mxu0 %v1936_v49 }
  0x57   :  { %662 = vmatpush1.bf16.msra.mxu1 %v1939_v50 }
  0x58   :  { %663 = vmatprep.subr.bf16.mxu1 %v1943_v52 }
  0x59   :  { %623 = vmatpush1.bf16.msra.mxu0 %v1946_v53 }
  0x5a   :  { %624 = vmatprep.subr.bf16.mxu0 %v1949_v54 }
  0x5b   :  { %664 = vmatpush1.bf16.msra.mxu1 %v1952_v55 }
  0x5c   :  { %665 = vmatprep.subr.bf16.mxu1 %v1956_v56 }
  0x5d   :  { %625 = vmatpush1.bf16.msra.mxu0 %v1959_v57 }
  0x5e   :  { %728 = vmatprep.subr.bf16.mxu0 %v1838_v15 }
  0x5f   :  { %666 = vmatpush1.bf16.msra.mxu1 %v1965_v58 }
  0x60   :  { %769 = vmatprep.subr.bf16.mxu1 %v1842_v19 }
  0xf3   :  { %v2016_v0 = vpop.f32.mrb[0].mxu0 }
  0xf4   :  { %v2020_v2 = vpop.f32.mrb[1].mxu0 }
  0xf5   :  { %v189_v7 = vpop.f32.mrb[2].mxu0  ;;  %v258_v8 = vpop.f32.mrb[0].mxu1 }
  0xf6   :  { %v2027_v10 = vadd.f32 %v189_v7, %v2018_v1  ;;  %v191_v11 = vpop.f32.mrb[3].mxu0  ;;  %v260_v12 = vpop.f32.mrb[1].mxu1 }
  0xf7   :  { %v2029_v13 = vadd.f32 %v191_v11, %v87_v6  ;;  %v262_v4 = vpop.f32.mrb[2].mxu1 }
  0xf8   :  { %v2032_v14 = vadd.f32 %v262_v4, %v2022_v5  ;;  %v264_v16 = vpop.f32.mrb[3].mxu1 }
  0xf9   :  { %v2035_v17 = vadd.f32 %v264_v16, %v2024_v9 }
  0xfb   :  { %v195_v18 = vpop.f32.mrb[4].mxu0 }
  0xfc   :  { %v2038_v25 = vadd.f32 %v195_v18, %v2018_v1  ;;  %v197_v26 = vpop.f32.mrb[5].mxu0 }
  0xfd   :  { %v2040_v29 = vadd.f32 %v197_v26, %v87_v6  ;;  %v199_v36 = vpop.f32.mrb[6].mxu0  ;;  %v268_v37 = vpop.f32.mrb[4].mxu1 }
  0xfe   :  { %v2043_v40 = vadd.f32 %v199_v36, %v2018_v1  ;;  %v201_v47 = vpop.f32.mrb[7].mxu0  ;;  %v2046_v48 = vadd.f32 %v268_v37, %v2022_v5  ;;  %v270_v51 = vpop.f32.mrb[5].mxu1 }
  0xff   :  { %v2048_v59 = vadd.f32 %v201_v47, %v87_v6  ;;  %v2051_v60 = vadd.f32 %v270_v51, %v2024_v9  ;;  %v272_v61 = vpop.f32.mrb[6].mxu1 }
 0x100   :  { %2418 = vst [vmem:[#allocation9_spill] sm:$0xff] %v2043_v40  ;;  %v2054_v62 = vadd.f32 %v272_v61, %v2022_v5  ;;  %v274_v63 = vpop.f32.mrb[7].mxu1 }
 0x101   :  { %2419 = vst [vmem:[#allocation10_spill] sm:$0xff] %v2048_v59  ;;  %2420 = vst [vmem:[#allocation11_spill] sm:$0xff] %v2051_v60  ;;  %v2057_v7 = vadd.f32 %v274_v63, %v2024_v9 }
 0x102   :  { %2421 = vst [vmem:[#allocation12_spill] sm:$0xff] %v2054_v62 }
 0x103   :  { %2422 = vst [vmem:[#allocation13_spill] sm:$0xff] %v2057_v7  ;;  %v205_v11 = vpop.f32.mrb[8].mxu0 }
 0x104   :  { %v2060_v4 = vadd.f32 %v205_v11, %v2018_v1  ;;  %v207_v16 = vpop.f32.mrb[9].mxu0 }
 0x105   :  { %v2062_v18 = vadd.f32 %v207_v16, %v87_v6  ;;  %v209_v26 = vpop.f32.mrb[10].mxu0  ;;  %v278_v36 = vpop.f32.mrb[8].mxu1 }
 0x106   :  { %2423 = vst [vmem:[#allocation14_spill] sm:$0xff] %v2060_v4  ;;  %v2065_v37 = vadd.f32 %v209_v26, %v2018_v1  ;;  %v211_v47 = vpop.f32.mrb[11].mxu0  ;;  %v2068_v51 = vadd.f32 %v278_v36, %v2022_v5  ;;  %v280_v61 = vpop.f32.mrb[9].mxu1 }
 0x107   :  { %2424 = vst [vmem:[#allocation15_spill] sm:$0xff] %v2062_v18  ;;  %v2070_v3 = vadd.f32 %v211_v47, %v87_v6  ;;  %v2073_v63 = vadd.f32 %v280_v61, %v2024_v9  ;;  %v282_v11 = vpop.f32.mrb[10].mxu1 }
 0x108   :  { %2425 = vst [vmem:[#allocation16_spill] sm:$0xff] %v2065_v37  ;;  %2426 = vst [vmem:[#allocation17_spill] sm:$0xff] %v2068_v51  ;;  %v2076_v4 = vadd.f32 %v282_v11, %v2022_v5  ;;  %v284_v16 = vpop.f32.mrb[11].mxu1 }
 0x109   :  { %2427 = vst [vmem:[#allocation18_spill] sm:$0xff] %v2070_v3  ;;  %2428 = vst [vmem:[#allocation19_spill] sm:$0xff] %v2073_v63  ;;  %v2079_v18 = vadd.f32 %v284_v16, %v2024_v9 }
 0x10a   :  { %2429 = vst [vmem:[#allocation20_spill] sm:$0xff] %v2076_v4 }
 0x10b   :  { %2430 = vst [vmem:[#allocation21_spill] sm:$0xff] %v2079_v18  ;;  %v215_v26 = vpop.f32.mrb[12].mxu0 }
 0x10c   :  { %v2082_v37 = vadd.f32 %v215_v26, %v2018_v1  ;;  %v217_v36 = vpop.f32.mrb[13].mxu0 }
 0x10d   :  { %v2084_v51 = vadd.f32 %v217_v36, %v87_v6  ;;  %v219_v47 = vpop.f32.mrb[14].mxu0  ;;  %v288_v3 = vpop.f32.mrb[12].mxu1 }
 0x10e   :  { %2431 = vst [vmem:[#allocation22_spill] sm:$0xff] %v2082_v37  ;;  %v2087_v61 = vadd.f32 %v219_v47, %v2018_v1  ;;  %v221_v63 = vpop.f32.mrb[15].mxu0  ;;  %v2090_v11 = vadd.f32 %v288_v3, %v2022_v5  ;;  %v290_v4 = vpop.f32.mrb[13].mxu1  ;;  %v186_v47 = vadd.f32 %v2016_v0, %v2018_v1  ;;  %v188_v3 = vadd.f32 %v2020_v2, %v87_v6 }
 0x10f   :  { %2432 = vst [vmem:[#allocation23_spill] sm:$0xff] %v2084_v51  ;;  %v2092_v7 = vadd.f32 %v221_v63, %v87_v6  ;;  %v2095_v16 = vadd.f32 %v290_v4, %v2024_v9  ;;  %v292_v26 = vpop.f32.mrb[14].mxu1  ;;  %v259_v63 = vadd.f32 %v258_v8, %v2022_v5  ;;  %v261_v4 = vadd.f32 %v260_v12, %v2024_v9 }
 0x110   :  { %2433 = vst [vmem:[#allocation24_spill] sm:$0xff] %v2087_v61  ;;  %2434 = vst [vmem:[#allocation25_spill] sm:$0xff] %v2090_v11  ;;  %v2098_v37 = vadd.f32 %v292_v26, %v2022_v5  ;;  %v294_v36 = vpop.f32.mrb[15].mxu1 }
 0x111   :  { %2435 = vst [vmem:[#allocation26_spill] sm:$0xff] %v2092_v7  ;;  %2436 = vst [vmem:[#allocation27_spill] sm:$0xff] %v2095_v16  ;;  %v2101_v51 = vadd.f32 %v294_v36, %v2024_v9 }
 0x112   :  { %2437 = vst [vmem:[#allocation28_spill] sm:$0xff] %v2098_v37 }
 0x113   :  { %2438 = vst [vmem:[#allocation29_spill] sm:$0xff] %v2101_v51  ;;  %v527_v61 = vpop.f32.mrb[16].mxu0 }
 0x114   :  { %v575_v7 = vadd.f32 %v527_v61, %v186_v47  ;;  %v529_v11 = vpop.f32.mrb[17].mxu0 }
 0x115   :  { %v576_v16 = vadd.f32 %v529_v11, %v188_v3  ;;  %v531_v18 = vpop.f32.mrb[18].mxu0  ;;  %v568_v26 = vpop.f32.mrb[16].mxu1 }
 0x116   :  { %v1490_v37 = vmul.f32 -1.442695, %v575_v7  ;;  %v577_v59 = vadd.f32 %v568_v26, %v259_v63  ;;  %v532_v62 = vpop.f32.mrb[19].mxu0  ;;  %v570_v36 = vpop.f32.mrb[17].mxu1 }
 0x117   :  { %v1491_v51 = vmul.f32 -1.442695, %v576_v16  ;;  %v578_v40 = vadd.f32 %v570_v36, %v261_v4  ;;  %v572_v60 = vpop.f32.mrb[18].mxu1 }
 0x118   :  { %1570 = vpow2.f32 %v1490_v37  ;;  %v573_v0 = vpop.f32.mrb[19].mxu1 }
 0x119   :  { %1572 = vpow2.f32 %v1491_v51  ;;  %v1492_v1 = vmul.f32 -1.442695, %v578_v40 }
 0x11b   :  { %1574 = vpow2.f32 %v1492_v1 }
 0x11c   :  { %1576 = vtanh.f32 %v577_v59  ;;  %v2439_v59 = vmov 0  }
 0x122   :  { %v1571_v2 = vpop.eup %1570 }
 0x123   :  { %v1573_v5 = vpop.eup %1572  ;;  %v582_v6 = vadd.f32 1.0, %v1571_v2 }
 0x124   :  { %v588_v8 = vadd.f32 1.0, %v1573_v5 }
 0x125   :  { %1578 = vrcp.f32 %v582_v6  ;;  %v1575_v9 = vpop.eup %1574 }
 0x126   :  { %1580 = vrcp.f32 %v588_v8  ;;  %v1577_v12 = vpop.eup %1576  ;;  %v595_v61 = vadd.f32 1.0, %v1575_v9 }
 0x128   :  { %1582 = vrcp.f32 %v595_v61 }
 0x12f   :  { %v1579_v7 = vpop.eup %1578 }
 0x130   :  { %v1581_v62 = vpop.eup %1580  ;;  %v599_v18 = vmul.f32 %v1579_v7, %v1577_v12 }
 0x131   :  { %v598_v11 = vmul.f32 0.0, %v1581_v62 }
 0x132   :  { %v1583_v40 = vpop.eup %1582 }
 0x133   :  { %v2108_v60 = vadd.f32 %v599_v18, %v598_v11 }
 0x135   :  { %1584 = vtanh.f32 %v2108_v60 }
 0x13f   :  { %v1585_v37 = vpop.eup %1584 }
 0x140   :  { %v602_v51 = vmul.f32 %v1585_v37, %v1583_v40 }
 0x142   :  { %603 = vst [vmem:[#allocation6] sm:$0xff] %v602_v51  ;;  %v609_v16 = vpack.c.bf16 %v602_v51, %v602_v51 }
 0x144   :  { %643 = vmatmul.mubr.bf16.vlgmr.msra.gmra.mrb[20].mxu0 %v609_v16  ;;  %684 = vmatmul.mubr.bf16.vlgmr.msra.gmra.mrb[20].mxu1 %v609_v16 }
 0x145   :  { %729 = vmatpush1.bf16.msra.mxu0 %v1844_v20  ;;  %770 = vmatpush1.bf16.msra.mxu1 %v1850_v22 }
 0x146   :  { %730 = vmatprep.subr.bf16.mxu0 %v1848_v21  ;;  %771 = vmatprep.subr.bf16.mxu1 %v1856_v24 }
 0x147   :  { %760 = vmatprep.mubr.bf16.mxu0 %v2439_v59  ;;  %801 = vmatprep.mubr.bf16.mxu1 %v2439_v59 }
 0x149   :  { %731 = vmatpush1.bf16.msra.mxu0 %v1854_v23  ;;  %772 = vmatpush1.bf16.msra.mxu1 %v1871_v28 }
 0x14a   :  { %732 = vmatprep.subr.bf16.mxu0 %v1868_v27  ;;  %773 = vmatprep.subr.bf16.mxu1 %v1875_v30 }
 0x14d   :  { %733 = vmatpush1.bf16.msra.mxu0 %v1878_v31  ;;  %774 = vmatpush1.bf16.msra.mxu1 %v1884_v33 }
 0x14e   :  { %734 = vmatprep.subr.bf16.mxu0 %v1881_v32  ;;  %775 = vmatprep.subr.bf16.mxu1 %v1888_v34 }
 0x151   :  { %735 = vmatpush1.bf16.msra.mxu0 %v1891_v35  ;;  %776 = vmatpush1.bf16.msra.mxu1 %v1905_v39 }
 0x152   :  { %736 = vmatprep.subr.bf16.mxu0 %v1902_v38  ;;  %777 = vmatprep.subr.bf16.mxu1 %v1909_v41 }
 0x155   :  { %737 = vmatpush1.bf16.msra.mxu0 %v1912_v42  ;;  %778 = vmatpush1.bf16.msra.mxu1 %v1918_v44 }
 0x156   :  { %738 = vmatprep.subr.bf16.mxu0 %v1915_v43  ;;  %779 = vmatprep.subr.bf16.mxu1 %v1922_v45 }
 0x159   :  { %739 = vmatpush1.bf16.msra.mxu0 %v1925_v46  ;;  %780 = vmatpush1.bf16.msra.mxu1 %v1939_v50 }
 0x15a   :  { %740 = vmatprep.subr.bf16.mxu0 %v1936_v49  ;;  %781 = vmatprep.subr.bf16.mxu1 %v1943_v52 }
 0x15d   :  { %741 = vmatpush1.bf16.msra.mxu0 %v1946_v53  ;;  %782 = vmatpush1.bf16.msra.mxu1 %v1952_v55 }
 0x15e   :  { %742 = vmatprep.subr.bf16.mxu0 %v1949_v54  ;;  %783 = vmatprep.subr.bf16.mxu1 %v1956_v56 }
 0x161   :  { %743 = vmatpush1.bf16.msra.mxu0 %v1959_v57  ;;  %784 = vmatpush1.bf16.msra.mxu1 %v1965_v58 }
 0x162   :  { %846 = vmatprep.subr.bf16.mxu0 %v1838_v15  ;;  %887 = vmatprep.subr.bf16.mxu1 %v1842_v19 }
 0x217   :  { %v644_v47 = vpop.f32.mrb[20].mxu0  ;;  %v685_v3 = vpop.f32.mrb[20].mxu1 }
 0x218   :  { %v692_v63 = vadd.f32 %v644_v47, %v2027_v10  ;;  %v694_v4 = vadd.f32 %v685_v3, %v2032_v14  ;;  %v646_v26 = vpop.f32.mrb[21].mxu0  ;;  %v687_v36 = vpop.f32.mrb[21].mxu1 }
 0x219   :  { %v693_v0 = vadd.f32 %v646_v26, %v2029_v13  ;;  %v695_v1 = vadd.f32 %v687_v36, %v2035_v17  ;;  %v648_v2 = vpop.f32.mrb[22].mxu0  ;;  %v689_v5 = vpop.f32.mrb[22].mxu1 }
 0x21a   :  { %v1493_v6 = vmul.f32 -1.442695, %v692_v63  ;;  %v649_v8 = vpop.f32.mrb[23].mxu0  ;;  %v690_v9 = vpop.f32.mrb[23].mxu1 }
 0x21b   :  { %v1494_v12 = vmul.f32 -1.442695, %v693_v0  ;;  %v1495_v7 = vmul.f32 -1.442695, %v695_v1 }
 0x21c   :  { %1586 = vpow2.f32 %v1493_v6  ;;  %v2440_v6 = vld [vmem:[#allocation11_spill] sm:$0xff] }
 0x21d   :  { %1588 = vpow2.f32 %v1494_v12 }
 0x21e   :  { %1590 = vpow2.f32 %v1495_v7 }
 0x21f   :  { %1592 = vtanh.f32 %v694_v4 }
 0x226   :  { %v1587_v62 = vpop.eup %1586 }
 0x227   :  { %v1589_v18 = vpop.eup %1588  ;;  %v699_v10 = vadd.f32 1.0, %v1587_v62 }
 0x228   :  { %v705_v14 = vadd.f32 1.0, %v1589_v18  ;;  %v1591_v13 = vpop.eup %1590 }
 0x229   :  { %1594 = vrcp.f32 %v699_v10  ;;  %v1593_v61 = vpop.eup %1592  ;;  %v712_v37 = vadd.f32 1.0, %v1591_v13 }
 0x22a   :  { %1596 = vrcp.f32 %v705_v14 }
 0x22b   :  { %1598 = vrcp.f32 %v712_v37 }
 0x233   :  { %v1595_v17 = vpop.eup %1594 }
 0x234   :  { %v1597_v11 = vpop.eup %1596  ;;  %v716_v40 = vmul.f32 %v1595_v17, %v1593_v61 }
 0x235   :  { %v715_v51 = vmul.f32 %v1597_v11, %v2108_v60  ;;  %v1599_v47 = vpop.eup %1598 }
 0x237   :  { %v2150_v16 = vadd.f32 %v716_v40, %v715_v51 }
 0x239   :  { %1600 = vtanh.f32 %v2150_v16 }
 0x243   :  { %v1601_v3 = vpop.eup %1600 }
 0x244   :  { %v719_v63 = vmul.f32 %v1601_v3, %v1599_v47 }
 0x246   :  { %721 = vst [vmem:[#allocation6 + $0x8] sm:$0xff] %v719_v63  ;;  %v727_v4 = vpack.c.bf16 %v719_v63, %v719_v63 }
 0x248   :  { %761 = vmatmul.mubr.bf16.vlgmr.msra.gmra.mrb[24].mxu0 %v727_v4  ;;  %802 = vmatmul.mubr.bf16.vlgmr.msra.gmra.mrb[24].mxu1 %v727_v4 }
 0x249   :  { %847 = vmatpush1.bf16.msra.mxu0 %v1844_v20  ;;  %888 = vmatpush1.bf16.msra.mxu1 %v1850_v22 }
 0x24a   :  { %848 = vmatprep.subr.bf16.mxu0 %v1848_v21  ;;  %889 = vmatprep.subr.bf16.mxu1 %v1856_v24 }
 0x24b   :  { %878 = vmatprep.mubr.bf16.mxu0 %v2439_v59  ;;  %919 = vmatprep.mubr.bf16.mxu1 %v2439_v59 }
 0x24d   :  { %849 = vmatpush1.bf16.msra.mxu0 %v1854_v23  ;;  %890 = vmatpush1.bf16.msra.mxu1 %v1871_v28 }
 0x24e   :  { %850 = vmatprep.subr.bf16.mxu0 %v1868_v27  ;;  %891 = vmatprep.subr.bf16.mxu1 %v1875_v30 }
 0x251   :  { %851 = vmatpush1.bf16.msra.mxu0 %v1878_v31  ;;  %892 = vmatpush1.bf16.msra.mxu1 %v1884_v33 }
 0x252   :  { %852 = vmatprep.subr.bf16.mxu0 %v1881_v32  ;;  %893 = vmatprep.subr.bf16.mxu1 %v1888_v34 }
 0x255   :  { %853 = vmatpush1.bf16.msra.mxu0 %v1891_v35  ;;  %894 = vmatpush1.bf16.msra.mxu1 %v1905_v39 }
 0x256   :  { %854 = vmatprep.subr.bf16.mxu0 %v1902_v38  ;;  %895 = vmatprep.subr.bf16.mxu1 %v1909_v41 }
 0x259   :  { %855 = vmatpush1.bf16.msra.mxu0 %v1912_v42  ;;  %896 = vmatpush1.bf16.msra.mxu1 %v1918_v44 }
 0x25a   :  { %856 = vmatprep.subr.bf16.mxu0 %v1915_v43  ;;  %897 = vmatprep.subr.bf16.mxu1 %v1922_v45 }
 0x25d   :  { %857 = vmatpush1.bf16.msra.mxu0 %v1925_v46  ;;  %898 = vmatpush1.bf16.msra.mxu1 %v1939_v50 }
 0x25e   :  { %858 = vmatprep.subr.bf16.mxu0 %v1936_v49  ;;  %899 = vmatprep.subr.bf16.mxu1 %v1943_v52 }
 0x261   :  { %859 = vmatpush1.bf16.msra.mxu0 %v1946_v53  ;;  %900 = vmatpush1.bf16.msra.mxu1 %v1952_v55 }
 0x262   :  { %860 = vmatprep.subr.bf16.mxu0 %v1949_v54  ;;  %901 = vmatprep.subr.bf16.mxu1 %v1956_v56 }
 0x265   :  { %861 = vmatpush1.bf16.msra.mxu0 %v1959_v57  ;;  %902 = vmatpush1.bf16.msra.mxu1 %v1965_v58 }
 0x266   :  { %964 = vmatprep.subr.bf16.mxu0 %v1838_v15  ;;  %1005 = vmatprep.subr.bf16.mxu1 %v1842_v19 }
 0x31b   :  { %v762_v60 = vpop.f32.mrb[24].mxu0  ;;  %v803_v26 = vpop.f32.mrb[24].mxu1 }
 0x31c   :  { %v810_v36 = vadd.f32 %v762_v60, %v2038_v25  ;;  %v812_v0 = vadd.f32 %v803_v26, %v2046_v48  ;;  %v764_v1 = vpop.f32.mrb[25].mxu0  ;;  %v805_v2 = vpop.f32.mrb[25].mxu1 }
 0x31d   :  { %v811_v5 = vadd.f32 %v764_v1, %v2040_v29  ;;  %v813_v8 = vadd.f32 %v805_v2, %v2440_v6  ;;  %v766_v9 = vpop.f32.mrb[26].mxu0  ;;  %v807_v12 = vpop.f32.mrb[26].mxu1  ;;  %v2442_v2 = vld [vmem:[#allocation12_spill] sm:$0xff] }
 0x31e   :  { %v1496_v7 = vmul.f32 -1.442695, %v810_v36  ;;  %v767_v62 = vpop.f32.mrb[27].mxu0  ;;  %v808_v18 = vpop.f32.mrb[27].mxu1  ;;  %v2443_v9 = vld [vmem:[#allocation10_spill] sm:$0xff] }
 0x31f   :  { %v1497_v10 = vmul.f32 -1.442695, %v811_v5  ;;  %v1498_v14 = vmul.f32 -1.442695, %v813_v8 }
 0x320   :  { %1602 = vpow2.f32 %v1496_v7  ;;  %v2444_v7 = vld [vmem:[#allocation13_spill] sm:$0xff] }
 0x321   :  { %1604 = vpow2.f32 %v1497_v10 }
 0x322   :  { %1606 = vpow2.f32 %v1498_v14 }
 0x323   :  { %1608 = vtanh.f32 %v812_v0  ;;  %v2441_v0 = vld [vmem:[#allocation9_spill] sm:$0xff] }
 0x32a   :  { %v1603_v13 = vpop.eup %1602 }
 0x32b   :  { %v1605_v61 = vpop.eup %1604  ;;  %v817_v25 = vadd.f32 1.0, %v1603_v13 }
 0x32c   :  { %v823_v48 = vadd.f32 1.0, %v1605_v61  ;;  %v1607_v29 = vpop.eup %1606 }
 0x32d   :  { %1610 = vrcp.f32 %v817_v25  ;;  %v1609_v17 = vpop.eup %1608  ;;  %v830_v51 = vadd.f32 1.0, %v1607_v29 }
 0x32e   :  { %1612 = vrcp.f32 %v823_v48 }
 0x32f   :  { %1614 = vrcp.f32 %v830_v51 }
 0x337   :  { %v1611_v11 = vpop.eup %1610 }
 0x338   :  { %v1613_v40 = vpop.eup %1612  ;;  %v834_v37 = vmul.f32 %v1611_v11, %v1609_v17 }
 0x339   :  { %v833_v47 = vmul.f32 %v1613_v40, %v2150_v16  ;;  %v1615_v63 = vpop.eup %1614 }
 0x33b   :  { %v2192_v3 = vadd.f32 %v834_v37, %v833_v47 }
 0x33d   :  { %1616 = vtanh.f32 %v2192_v3 }
 0x347   :  { %v1617_v4 = vpop.eup %1616 }
 0x348   :  { %v837_v60 = vmul.f32 %v1617_v4, %v1615_v63 }
 0x34a   :  { %839 = vst [vmem:[#allocation6 + $0x10] sm:$0xff] %v837_v60  ;;  %v845_v26 = vpack.c.bf16 %v837_v60, %v837_v60 }
 0x34c   :  { %879 = vmatmul.mubr.bf16.vlgmr.msra.gmra.mrb[28].mxu0 %v845_v26  ;;  %920 = vmatmul.mubr.bf16.vlgmr.msra.gmra.mrb[28].mxu1 %v845_v26 }
 0x34d   :  { %965 = vmatpush1.bf16.msra.mxu0 %v1844_v20  ;;  %1006 = vmatpush1.bf16.msra.mxu1 %v1850_v22 }
 0x34e   :  { %966 = vmatprep.subr.bf16.mxu0 %v1848_v21  ;;  %1007 = vmatprep.subr.bf16.mxu1 %v1856_v24 }
 0x34f   :  { %996 = vmatprep.mubr.bf16.mxu0 %v2439_v59  ;;  %1037 = vmatprep.mubr.bf16.mxu1 %v2439_v59 }
 0x351   :  { %967 = vmatpush1.bf16.msra.mxu0 %v1854_v23  ;;  %1008 = vmatpush1.bf16.msra.mxu1 %v1871_v28 }
 0x352   :  { %968 = vmatprep.subr.bf16.mxu0 %v1868_v27  ;;  %1009 = vmatprep.subr.bf16.mxu1 %v1875_v30 }
 0x355   :  { %969 = vmatpush1.bf16.msra.mxu0 %v1878_v31  ;;  %1010 = vmatpush1.bf16.msra.mxu1 %v1884_v33 }
 0x356   :  { %970 = vmatprep.subr.bf16.mxu0 %v1881_v32  ;;  %1011 = vmatprep.subr.bf16.mxu1 %v1888_v34 }
 0x359   :  { %971 = vmatpush1.bf16.msra.mxu0 %v1891_v35  ;;  %1012 = vmatpush1.bf16.msra.mxu1 %v1905_v39 }
 0x35a   :  { %972 = vmatprep.subr.bf16.mxu0 %v1902_v38  ;;  %1013 = vmatprep.subr.bf16.mxu1 %v1909_v41 }
 0x35d   :  { %973 = vmatpush1.bf16.msra.mxu0 %v1912_v42  ;;  %1014 = vmatpush1.bf16.msra.mxu1 %v1918_v44 }
 0x35e   :  { %974 = vmatprep.subr.bf16.mxu0 %v1915_v43  ;;  %1015 = vmatprep.subr.bf16.mxu1 %v1922_v45 }
 0x361   :  { %975 = vmatpush1.bf16.msra.mxu0 %v1925_v46  ;;  %1016 = vmatpush1.bf16.msra.mxu1 %v1939_v50 }
 0x362   :  { %976 = vmatprep.subr.bf16.mxu0 %v1936_v49  ;;  %1017 = vmatprep.subr.bf16.mxu1 %v1943_v52 }
 0x365   :  { %977 = vmatpush1.bf16.msra.mxu0 %v1946_v53  ;;  %1018 = vmatpush1.bf16.msra.mxu1 %v1952_v55 }
 0x366   :  { %978 = vmatprep.subr.bf16.mxu0 %v1949_v54  ;;  %1019 = vmatprep.subr.bf16.mxu1 %v1956_v56 }
 0x369   :  { %979 = vmatpush1.bf16.msra.mxu0 %v1959_v57  ;;  %1020 = vmatpush1.bf16.msra.mxu1 %v1965_v58 }
 0x36a   :  { %1082 = vmatprep.subr.bf16.mxu0 %v1838_v15  ;;  %1123 = vmatprep.subr.bf16.mxu1 %v1842_v19 }
 0x41f   :  { %v880_v16 = vpop.f32.mrb[28].mxu0  ;;  %v921_v36 = vpop.f32.mrb[28].mxu1 }
 0x420   :  { %v928_v1 = vadd.f32 %v880_v16, %v2441_v0  ;;  %v930_v5 = vadd.f32 %v921_v36, %v2442_v2  ;;  %v882_v6 = vpop.f32.mrb[29].mxu0  ;;  %v923_v8 = vpop.f32.mrb[29].mxu1 }
 0x421   :  { %v929_v12 = vadd.f32 %v882_v6, %v2443_v9  ;;  %v931_v62 = vadd.f32 %v923_v8, %v2444_v7  ;;  %v884_v18 = vpop.f32.mrb[30].mxu0  ;;  %v925_v10 = vpop.f32.mrb[30].mxu1 }
 0x422   :  { %v1499_v14 = vmul.f32 -1.442695, %v928_v1  ;;  %v885_v13 = vpop.f32.mrb[31].mxu0  ;;  %v926_v61 = vpop.f32.mrb[31].mxu1 }
 0x423   :  { %v1500_v15 = vmul.f32 -1.442695, %v929_v12  ;;  %v1501_v19 = vmul.f32 -1.442695, %v931_v62 }
 0x424   :  { %1618 = vpow2.f32 %v1499_v14 }
 0x425   :  { %1620 = vpow2.f32 %v1500_v15 }
 0x426   :  { %1622 = vpow2.f32 %v1501_v19  ;;  %v2283_v19 = vld [vmem:[#allocation3] ss:$16 sps:$4 sm:$0xff]  }
 0x427   :  { %1624 = vtanh.f32 %v930_v5 }
 0x42e   :  { %v1619_v25 = vpop.eup %1618 }
 0x42f   :  { %v1621_v48 = vpop.eup %1620  ;;  %v935_v29 = vadd.f32 1.0, %v1619_v25  ;;  %v2286_v25 = vld [vmem:[#allocation3 + $0x8] ss:$16 sps:$4 sm:$0xff]  }
 0x430   :  { %v941_v17 = vadd.f32 1.0, %v1621_v48  ;;  %v1623_v11 = vpop.eup %1622  ;;  %v2289_v48 = vld [vmem:[#allocation3 + $0x24] ss:$16 sps:$4 sm:$0xff]  }
 0x431   :  { %1626 = vrcp.f32 %v935_v29  ;;  %v1625_v40 = vpop.eup %1624  ;;  %v948_v63 = vadd.f32 1.0, %v1623_v11  ;;  %v2292_v29 = vld [vmem:[#allocation3 + $0x2c] ss:$16 sps:$4 sm:$0xff]   ;;  %v2300_v11 = vld [vmem:[#allocation3 + $0x28] ss:$16 sps:$4 sm:$0xff]  }
 0x432   :  { %1628 = vrcp.f32 %v941_v17  ;;  %v2297_v17 = vld [vmem:[#allocation3 + $0x20] ss:$16 sps:$4 sm:$0xff]  }
 0x433   :  { %1630 = vrcp.f32 %v948_v63  ;;  %v2315_v63 = vld [vmem:[#allocation3 + $0x64] ss:$16 sps:$4 sm:$0xff]  }
 0x43b   :  { %v1627_v37 = vpop.eup %1626 }
 0x43c   :  { %v1629_v51 = vpop.eup %1628  ;;  %v952_v47 = vmul.f32 %v1627_v37, %v1625_v40  ;;  %v2303_v40 = vld [vmem:[#allocation3 + $0x44] ss:$16 sps:$4 sm:$0xff]   ;;  %v2306_v37 = vld [vmem:[#allocation3 + $0x4c] ss:$16 sps:$4 sm:$0xff]  }
 0x43d   :  { %v951_v4 = vmul.f32 %v1629_v51, %v2192_v3  ;;  %v1631_v26 = vpop.eup %1630  ;;  %v2309_v51 = vld [vmem:[#allocation3 + $0x40] ss:$16 sps:$4 sm:$0xff]  }
 0x43f   :  { %v2234_v60 = vadd.f32 %v952_v47, %v951_v4  ;;  %v2312_v47 = vld [vmem:[#allocation3 + $0x48] ss:$16 sps:$4 sm:$0xff]   ;;  %v2318_v4 = vld [vmem:[#allocation3 + $0x6c] ss:$16 sps:$4 sm:$0xff]  }
 0x441   :  { %1632 = vtanh.f32 %v2234_v60 }
 0x44b   :  { %v1633_v16 = vpop.eup %1632 }
 0x44c   :  { %v955_v36 = vmul.f32 %v1633_v16, %v1631_v26  ;;  %v2324_v26 = vld [vmem:[#allocation3 + $0x68] ss:$16 sps:$4 sm:$0xff]   ;;  %v2327_v16 = vld [vmem:[#allocation3 + $0x84] ss:$16 sps:$4 sm:$0xff]  }
 0x44e   :  { %957 = vst [vmem:[#allocation6 + $0x18] sm:$0xff] %v955_v36  ;;  %v963_v0 = vpack.c.bf16 %v955_v36, %v955_v36  ;;  %v2330_v36 = vld [vmem:[#allocation3 + $0x8c] ss:$16 sps:$4 sm:$0xff]  }
 0x450   :  { %997 = vmatmul.mubr.bf16.vlgmr.msra.gmra.mrb[32].mxu0 %v963_v0  ;;  %1038 = vmatmul.mubr.bf16.vlgmr.msra.gmra.mrb[32].mxu1 %v963_v0  ;;  %v2333_v0 = vld [vmem:[#allocation3 + $0x80] ss:$16 sps:$4 sm:$0xff]  }
 0x451   :  { %1083 = vmatpush1.bf16.msra.mxu0 %v1844_v20  ;;  %1124 = vmatpush1.bf16.msra.mxu1 %v1850_v22  ;;  %v2269_v20 = vld [vmem:[#allocation3 + $0x4] ss:$16 sps:$4 sm:$0xff]  }
 0x452   :  { %1084 = vmatprep.subr.bf16.mxu0 %v1848_v21  ;;  %1125 = vmatprep.subr.bf16.mxu1 %v1856_v24  ;;  %v2272_v21 = vld [vmem:[#allocation3 + $0xc] ss:$16 sps:$4 sm:$0xff]  }
 0x453   :  { %1114 = vmatprep.mubr.bf16.mxu0 %v2439_v59  ;;  %1155 = vmatprep.mubr.bf16.mxu1 %v2439_v59  ;;  %v2445_v24 = vld [vmem:[#allocation14_spill] sm:$0xff] }
 0x455   :  { %1085 = vmatpush1.bf16.msra.mxu0 %v1854_v23  ;;  %1126 = vmatpush1.bf16.msra.mxu1 %v1871_v28  ;;  %v2446_v28 = vld [vmem:[#allocation17_spill] sm:$0xff] }
 0x456   :  { %1086 = vmatprep.subr.bf16.mxu0 %v1868_v27  ;;  %1127 = vmatprep.subr.bf16.mxu1 %v1875_v30 }
 0x459   :  { %1087 = vmatpush1.bf16.msra.mxu0 %v1878_v31  ;;  %1128 = vmatpush1.bf16.msra.mxu1 %v1884_v33  ;;  %v2447_v33 = vld [vmem:[#allocation15_spill] sm:$0xff] }
 0x45a   :  { %1088 = vmatprep.subr.bf16.mxu0 %v1881_v32  ;;  %1129 = vmatprep.subr.bf16.mxu1 %v1888_v34 }
 0x45d   :  { %1089 = vmatpush1.bf16.msra.mxu0 %v1891_v35  ;;  %1130 = vmatpush1.bf16.msra.mxu1 %v1905_v39  ;;  %v2448_v35 = vld [vmem:[#allocation19_spill] sm:$0xff] }
 0x45e   :  { %1090 = vmatprep.subr.bf16.mxu0 %v1902_v38  ;;  %1131 = vmatprep.subr.bf16.mxu1 %v1909_v41 }
 0x461   :  { %1091 = vmatpush1.bf16.msra.mxu0 %v1912_v42  ;;  %1132 = vmatpush1.bf16.msra.mxu1 %v1918_v44 }
 0x462   :  { %1092 = vmatprep.subr.bf16.mxu0 %v1915_v43  ;;  %1133 = vmatprep.subr.bf16.mxu1 %v1922_v45 }
 0x465   :  { %1093 = vmatpush1.bf16.msra.mxu0 %v1925_v46  ;;  %1134 = vmatpush1.bf16.msra.mxu1 %v1939_v50 }
 0x466   :  { %1094 = vmatprep.subr.bf16.mxu0 %v1936_v49  ;;  %1135 = vmatprep.subr.bf16.mxu1 %v1943_v52 }
 0x469   :  { %1095 = vmatpush1.bf16.msra.mxu0 %v1946_v53  ;;  %1136 = vmatpush1.bf16.msra.mxu1 %v1952_v55 }
 0x46a   :  { %1096 = vmatprep.subr.bf16.mxu0 %v1949_v54  ;;  %1137 = vmatprep.subr.bf16.mxu1 %v1956_v56 }
 0x46d   :  { %1097 = vmatpush1.bf16.msra.mxu0 %v1959_v57  ;;  %1138 = vmatpush1.bf16.msra.mxu1 %v1965_v58 }
 0x46e   :  { %1200 = vmatprep.subr.bf16.mxu0 %v2269_v20  ;;  %1241 = vmatprep.subr.bf16.mxu1 %v2272_v21 }
 0x523   :  { %v998_v22 = vpop.f32.mrb[32].mxu0  ;;  %v1039_v23 = vpop.f32.mrb[32].mxu1 }
 0x524   :  { %v1046_v27 = vadd.f32 %v998_v22, %v2445_v24  ;;  %v1048_v30 = vadd.f32 %v1039_v23, %v2446_v28  ;;  %v1000_v31 = vpop.f32.mrb[33].mxu0  ;;  %v1041_v32 = vpop.f32.mrb[33].mxu1  ;;  %v2336_v22 = vld [vmem:[#allocation3 + $0x88] ss:$16 sps:$4 sm:$0xff]   ;;  %v2339_v23 = vld [vmem:[#allocation3 + $0xa4] ss:$16 sps:$4 sm:$0xff]  }
 0x525   :  { %v1047_v34 = vadd.f32 %v1000_v31, %v2447_v33  ;;  %v1049_v38 = vadd.f32 %v1041_v32, %v2448_v35  ;;  %v1002_v39 = vpop.f32.mrb[34].mxu0  ;;  %v1043_v41 = vpop.f32.mrb[34].mxu1  ;;  %v2342_v24 = vld [vmem:[#allocation3 + $0xac] ss:$16 sps:$4 sm:$0xff]   ;;  %v2452_v33 = vld [vmem:[#allocation21_spill] sm:$0xff] }
 0x526   :  { %v1502_v42 = vmul.f32 -1.442695, %v1046_v27  ;;  %v1003_v43 = vpop.f32.mrb[35].mxu0  ;;  %v1044_v44 = vpop.f32.mrb[35].mxu1  ;;  %v2345_v27 = vld [vmem:[#allocation3 + $0xa0] ss:$16 sps:$4 sm:$0xff]  }
 0x527   :  { %v1503_v45 = vmul.f32 -1.442695, %v1047_v34  ;;  %v1504_v46 = vmul.f32 -1.442695, %v1049_v38  ;;  %v2449_v28 = vld [vmem:[#allocation16_spill] sm:$0xff]  ;;  %v2451_v32 = vld [vmem:[#allocation18_spill] sm:$0xff] }
 0x528   :  { %1634 = vpow2.f32 %v1502_v42 }
 0x529   :  { %1636 = vpow2.f32 %v1503_v45 }
 0x52a   :  { %1638 = vpow2.f32 %v1504_v46 }
 0x52b   :  { %1640 = vtanh.f32 %v1048_v30  ;;  %v2450_v30 = vld [vmem:[#allocation20_spill] sm:$0xff] }
 0x532   :  { %v1635_v3 = vpop.eup %1634 }
 0x533   :  { %v1637_v1 = vpop.eup %1636  ;;  %v1053_v2 = vadd.f32 1.0, %v1635_v3 }
 0x534   :  { %v1059_v5 = vadd.f32 1.0, %v1637_v1  ;;  %v1639_v6 = vpop.eup %1638 }
 0x535   :  { %1642 = vrcp.f32 %v1053_v2  ;;  %v1641_v8 = vpop.eup %1640  ;;  %v1066_v62 = vadd.f32 1.0, %v1639_v6 }
 0x536   :  { %1644 = vrcp.f32 %v1059_v5 }
 0x537   :  { %1646 = vrcp.f32 %v1066_v62  ;;  %v1722_v62 = vld [vmem:[#allocation3 + $0xc4] ss:$16 sps:$4 sm:$0xff]  }
 0x53f   :  { %v1643_v9 = vpop.eup %1642 }
 0x540   :  { %v1645_v12 = vpop.eup %1644  ;;  %v1070_v7 = vmul.f32 %v1643_v9, %v1641_v8 }
 0x541   :  { %v1069_v18 = vmul.f32 %v1645_v12, %v2234_v60  ;;  %v1647_v14 = vpop.eup %1646  ;;  %v2321_v60 = vld [vmem:[#allocation3 + $0x60] ss:$16 sps:$4 sm:$0xff]  }
 0x543   :  { %v2280_v10 = vadd.f32 %v1070_v7, %v1069_v18  ;;  %v1723_v18 = vld [vmem:[#allocation3 + $0xcc] ss:$16 sps:$4 sm:$0xff]  }
 0x545   :  { %1648 = vtanh.f32 %v2280_v10 }
 0x54f   :  { %v1649_v13 = vpop.eup %1648 }
 0x550   :  { %v1073_v61 = vmul.f32 %v1649_v13, %v1647_v14  ;;  %v1725_v14 = vld [vmem:[#allocation3 + $0xc8] ss:$16 sps:$4 sm:$0xff]   ;;  %v1726_v13 = vld [vmem:[#allocation3 + $0xe4] ss:$16 sps:$4 sm:$0xff]  }
 0x552   :  { %1075 = vst [vmem:[#allocation6 + $0x20] sm:$0xff] %v1073_v61  ;;  %v1081_v15 = vpack.c.bf16 %v1073_v61, %v1073_v61  ;;  %v1727_v61 = vld [vmem:[#allocation3 + $0xec] ss:$16 sps:$4 sm:$0xff]  }
 0x554   :  { %1115 = vmatmul.mubr.bf16.vlgmr.msra.gmra.mrb[36].mxu0 %v1081_v15  ;;  %1156 = vmatmul.mubr.bf16.vlgmr.msra.gmra.mrb[36].mxu1 %v1081_v15  ;;  %v1728_v15 = vld [vmem:[#allocation3 + $0xe0] ss:$16 sps:$4 sm:$0xff]  }
 0x555   :  { %1201 = vmatpush1.bf16.msra.mxu0 %v2283_v19  ;;  %1242 = vmatpush1.bf16.msra.mxu1 %v2286_v25 }
 0x556   :  { %1202 = vmatprep.subr.bf16.mxu0 %v2289_v48  ;;  %1243 = vmatprep.subr.bf16.mxu1 %v2292_v29 }
 0x557   :  { %1232 = vmatprep.mubr.bf16.mxu0 %v2439_v59  ;;  %1273 = vmatprep.mubr.bf16.mxu1 %v2439_v59 }
 0x559   :  { %1203 = vmatpush1.bf16.msra.mxu0 %v2297_v17  ;;  %1244 = vmatpush1.bf16.msra.mxu1 %v2300_v11 }
 0x55a   :  { %1204 = vmatprep.subr.bf16.mxu0 %v2303_v40  ;;  %1245 = vmatprep.subr.bf16.mxu1 %v2306_v37 }
 0x55d   :  { %1205 = vmatpush1.bf16.msra.mxu0 %v2309_v51  ;;  %1246 = vmatpush1.bf16.msra.mxu1 %v2312_v47 }
 0x55e   :  { %1206 = vmatprep.subr.bf16.mxu0 %v2315_v63  ;;  %1247 = vmatprep.subr.bf16.mxu1 %v2318_v4 }
 0x561   :  { %1207 = vmatpush1.bf16.msra.mxu0 %v2321_v60  ;;  %1248 = vmatpush1.bf16.msra.mxu1 %v2324_v26 }
 0x562   :  { %1208 = vmatprep.subr.bf16.mxu0 %v2327_v16  ;;  %1249 = vmatprep.subr.bf16.mxu1 %v2330_v36 }
 0x565   :  { %1209 = vmatpush1.bf16.msra.mxu0 %v2333_v0  ;;  %1250 = vmatpush1.bf16.msra.mxu1 %v2336_v22 }
 0x566   :  { %1210 = vmatprep.subr.bf16.mxu0 %v2339_v23  ;;  %1251 = vmatprep.subr.bf16.mxu1 %v2342_v24 }
 0x569   :  { %1211 = vmatpush1.bf16.msra.mxu0 %v2345_v27  ;;  %1252 = vmatpush1.bf16.msra.mxu1 %v1939_v50 }
 0x56a   :  { %1212 = vmatprep.subr.bf16.mxu0 %v1936_v49  ;;  %1253 = vmatprep.subr.bf16.mxu1 %v1943_v52 }
 0x56d   :  { %1213 = vmatpush1.bf16.msra.mxu0 %v1946_v53  ;;  %1254 = vmatpush1.bf16.msra.mxu1 %v1952_v55 }
 0x56e   :  { %1214 = vmatprep.subr.bf16.mxu0 %v1949_v54  ;;  %1255 = vmatprep.subr.bf16.mxu1 %v1956_v56 }
 0x571   :  { %1215 = vmatpush1.bf16.msra.mxu0 %v1959_v57  ;;  %1256 = vmatpush1.bf16.msra.mxu1 %v1965_v58 }
 0x572   :  { %1318 = vmatprep.subr.bf16.mxu0 %v2269_v20  ;;  %1359 = vmatprep.subr.bf16.mxu1 %v2272_v21 }
 0x627   :  { %v1116_v50 = vpop.f32.mrb[36].mxu0  ;;  %v1157_v49 = vpop.f32.mrb[36].mxu1 }
 0x628   :  { %v1164_v52 = vadd.f32 %v1116_v50, %v2449_v28  ;;  %v1166_v53 = vadd.f32 %v1157_v49, %v2450_v30  ;;  %v1118_v31 = vpop.f32.mrb[37].mxu0  ;;  %v1159_v55 = vpop.f32.mrb[37].mxu1 }
 0x629   :  { %v1165_v54 = vadd.f32 %v1118_v31, %v2451_v32  ;;  %v1167_v56 = vadd.f32 %v1159_v55, %v2452_v33  ;;  %v1120_v34 = vpop.f32.mrb[38].mxu0  ;;  %v1161_v57 = vpop.f32.mrb[38].mxu1 }
 0x62a   :  { %v1505_v35 = vmul.f32 -1.442695, %v1164_v52  ;;  %v1121_v58 = vpop.f32.mrb[39].mxu0  ;;  %v1162_v38 = vpop.f32.mrb[39].mxu1 }
 0x62b   :  { %v1506_v20 = vmul.f32 -1.442695, %v1165_v54  ;;  %v1507_v21 = vmul.f32 -1.442695, %v1167_v56 }
 0x62c   :  { %1650 = vpow2.f32 %v1505_v35 }
 0x62d   :  { %1652 = vpow2.f32 %v1506_v20  ;;  %v2457_v20 = vld [vmem:[#allocation24_spill] sm:$0xff] }
 0x62e   :  { %1654 = vpow2.f32 %v1507_v21 }
 0x62f   :  { %1656 = vtanh.f32 %v1166_v53 }
 0x636   :  { %v1651_v39 = vpop.eup %1650 }
 0x637   :  { %v1653_v41 = vpop.eup %1652  ;;  %v1171_v42 = vadd.f32 1.0, %v1651_v39  ;;  %v2458_v39 = vld [vmem:[#allocation28_spill] sm:$0xff] }
 0x638   :  { %v1177_v43 = vadd.f32 1.0, %v1653_v41  ;;  %v1655_v44 = vpop.eup %1654 }
 0x639   :  { %1658 = vrcp.f32 %v1171_v42  ;;  %v1657_v45 = vpop.eup %1656  ;;  %v1184_v2 = vadd.f32 1.0, %v1655_v44  ;;  %v2459_v44 = vld [vmem:[#allocation26_spill] sm:$0xff] }
 0x63a   :  { %1660 = vrcp.f32 %v1177_v43 }
 0x63b   :  { %1662 = vrcp.f32 %v1184_v2 }
 0x643   :  { %v1659_v46 = vpop.eup %1658 }
 0x644   :  { %v1661_v3 = vpop.eup %1660  ;;  %v1188_v1 = vmul.f32 %v1659_v46, %v1657_v45  ;;  %v2460_v46 = vld [vmem:[#allocation29_spill] sm:$0xff] }
 0x645   :  { %v1187_v5 = vmul.f32 %v1661_v3, %v2280_v10  ;;  %v1663_v8 = vpop.eup %1662  ;;  %v1724_v10 = vld [vmem:[#allocation3 + $0xc0] ss:$16 sps:$4 sm:$0xff]  }
 0x647   :  { %v2364_v6 = vadd.f32 %v1188_v1, %v1187_v5 }
 0x649   :  { %1664 = vtanh.f32 %v2364_v6 }
 0x653   :  { %v1665_v9 = vpop.eup %1664 }
 0x654   :  { %v1191_v12 = vmul.f32 %v1665_v9, %v1663_v8 }
 0x656   :  { %1193 = vst [vmem:[#allocation6 + $0x28] sm:$0xff] %v1191_v12  ;;  %v1199_v7 = vpack.c.bf16 %v1191_v12, %v1191_v12 }
 0x658   :  { %1233 = vmatmul.mubr.bf16.vlgmr.msra.gmra.mrb[40].mxu0 %v1199_v7  ;;  %1274 = vmatmul.mubr.bf16.vlgmr.msra.gmra.mrb[40].mxu1 %v1199_v7 }
 0x659   :  { %1319 = vmatpush1.bf16.msra.mxu0 %v2283_v19  ;;  %1360 = vmatpush1.bf16.msra.mxu1 %v2286_v25  ;;  %v1729_v19 = vld [vmem:[#allocation3 + $0xe8] ss:$16 sps:$4 sm:$0xff]  }
 0x65a   :  { %1320 = vmatprep.subr.bf16.mxu0 %v2289_v48  ;;  %1361 = vmatprep.subr.bf16.mxu1 %v2292_v29  ;;  %v2453_v29 = vld [vmem:[#allocation22_spill] sm:$0xff] }
 0x65b   :  { %1350 = vmatprep.mubr.bf16.mxu0 %v2439_v59  ;;  %1391 = vmatprep.mubr.bf16.mxu1 %v2439_v59  ;;  %v1721_v59 = vld [vmem:[#allocation3 + $0xa8] ss:$16 sps:$4 sm:$0xff]  }
 0x65d   :  { %1321 = vmatpush1.bf16.msra.mxu0 %v2297_v17  ;;  %1362 = vmatpush1.bf16.msra.mxu1 %v2300_v11  ;;  %v2454_v11 = vld [vmem:[#allocation25_spill] sm:$0xff] }
 0x65e   :  { %1322 = vmatprep.subr.bf16.mxu0 %v2303_v40  ;;  %1363 = vmatprep.subr.bf16.mxu1 %v2306_v37 }
 0x661   :  { %1323 = vmatpush1.bf16.msra.mxu0 %v2309_v51  ;;  %1364 = vmatpush1.bf16.msra.mxu1 %v2312_v47  ;;  %v2455_v47 = vld [vmem:[#allocation23_spill] sm:$0xff] }
 0x662   :  { %1324 = vmatprep.subr.bf16.mxu0 %v2315_v63  ;;  %1365 = vmatprep.subr.bf16.mxu1 %v2318_v4  ;;  %v2456_v4 = vld [vmem:[#allocation27_spill] sm:$0xff] }
 0x665   :  { %1325 = vmatpush1.bf16.msra.mxu0 %v2321_v60  ;;  %1366 = vmatpush1.bf16.msra.mxu1 %v2324_v26 }
 0x666   :  { %1326 = vmatprep.subr.bf16.mxu0 %v2327_v16  ;;  %1367 = vmatprep.subr.bf16.mxu1 %v2330_v36 }
 0x669   :  { %1327 = vmatpush1.bf16.msra.mxu0 %v2333_v0  ;;  %1368 = vmatpush1.bf16.msra.mxu1 %v2336_v22 }
 0x66a   :  { %1328 = vmatprep.subr.bf16.mxu0 %v2339_v23  ;;  %1369 = vmatprep.subr.bf16.mxu1 %v2342_v24 }
 0x66d   :  { %1329 = vmatpush1.bf16.msra.mxu0 %v2345_v27  ;;  %1370 = vmatpush1.bf16.msra.mxu1 %v1721_v59 }
 0x66e   :  { %1330 = vmatprep.subr.bf16.mxu0 %v1722_v62  ;;  %1371 = vmatprep.subr.bf16.mxu1 %v1723_v18 }
 0x671   :  { %1331 = vmatpush1.bf16.msra.mxu0 %v1724_v10  ;;  %1372 = vmatpush1.bf16.msra.mxu1 %v1725_v14 }
 0x672   :  { %1332 = vmatprep.subr.bf16.mxu0 %v1726_v13  ;;  %1373 = vmatprep.subr.bf16.mxu1 %v1727_v61 }
 0x675   :  { %1333 = vmatpush1.bf16.msra.mxu0 %v1728_v15  ;;  %1374 = vmatpush1.bf16.msra.mxu1 %v1729_v19 }
 0x72b   :  { %v1234_v25 = vpop.f32.mrb[40].mxu0  ;;  %v1275_v48 = vpop.f32.mrb[40].mxu1 }
 0x72c   :  { %v1282_v17 = vadd.f32 %v1234_v25, %v2453_v29  ;;  %v1284_v40 = vadd.f32 %v1275_v48, %v2454_v11  ;;  %v1236_v37 = vpop.f32.mrb[41].mxu0  ;;  %v1277_v51 = vpop.f32.mrb[41].mxu1 }
 0x72d   :  { %v1283_v63 = vadd.f32 %v1236_v37, %v2455_v47  ;;  %v1285_v60 = vadd.f32 %v1277_v51, %v2456_v4  ;;  %v1238_v26 = vpop.f32.mrb[42].mxu0  ;;  %v1279_v16 = vpop.f32.mrb[42].mxu1 }
 0x72e   :  { %v1508_v36 = vmul.f32 -1.442695, %v1282_v17  ;;  %v1239_v0 = vpop.f32.mrb[43].mxu0  ;;  %v1280_v22 = vpop.f32.mrb[43].mxu1 }
 0x72f   :  { %v1509_v23 = vmul.f32 -1.442695, %v1283_v63  ;;  %v1510_v24 = vmul.f32 -1.442695, %v1285_v60 }
 0x730   :  { %1666 = vpow2.f32 %v1508_v36 }
 0x731   :  { %1668 = vpow2.f32 %v1509_v23 }
 0x732   :  { %1670 = vpow2.f32 %v1510_v24 }
 0x733   :  { %1672 = vtanh.f32 %v1284_v40 }
 0x73a   :  { %v1667_v27 = vpop.eup %1666 }
 0x73b   :  { %v1669_v50 = vpop.eup %1668  ;;  %v1289_v49 = vadd.f32 1.0, %v1667_v27 }
 0x73c   :  { %v1295_v28 = vadd.f32 1.0, %v1669_v50  ;;  %v1671_v52 = vpop.eup %1670 }
 0x73d   :  { %1674 = vrcp.f32 %v1289_v49  ;;  %v1673_v30 = vpop.eup %1672  ;;  %v1302_v32 = vadd.f32 1.0, %v1671_v52 }
 0x73e   :  { %1676 = vrcp.f32 %v1295_v28 }
 0x73f   :  { %1678 = vrcp.f32 %v1302_v32 }
 0x747   :  { %v1675_v53 = vpop.eup %1674 }
 0x748   :  { %v1677_v31 = vpop.eup %1676  ;;  %v1306_v55 = vmul.f32 %v1675_v53, %v1673_v30 }
 0x749   :  { %v1305_v54 = vmul.f32 %v1677_v31, %v2364_v6  ;;  %v1679_v56 = vpop.eup %1678 }
 0x74b   :  { %v1307_v33 = vadd.f32 %v1306_v55, %v1305_v54 }
 0x74d   :  { %1680 = vtanh.f32 %v1307_v33 }
 0x757   :  { %v1681_v34 = vpop.eup %1680 }
 0x758   :  { %v1309_v57 = vmul.f32 %v1681_v34, %v1679_v56 }
 0x75a   :  { %1311 = vst [vmem:[#allocation6 + $0x30] sm:$0xff] %v1309_v57  ;;  %v1317_v35 = vpack.c.bf16 %v1309_v57, %v1309_v57 }
 0x75c   :  { %1351 = vmatmul.mubr.bf16.vlgmr.msra.gmra.mrb[44].mxu0 %v1317_v35  ;;  %1392 = vmatmul.mubr.bf16.vlgmr.msra.gmra.mrb[44].mxu1 %v1317_v35 }
 0x82f   :  { %v1352_v58 = vpop.f32.mrb[44].mxu0  ;;  %v1393_v38 = vpop.f32.mrb[44].mxu1 }
 0x830   :  { %v1400_v21 = vadd.f32 %v1352_v58, %v2457_v20  ;;  %v1402_v41 = vadd.f32 %v1393_v38, %v2458_v39  ;;  %v1354_v42 = vpop.f32.mrb[45].mxu0  ;;  %v1395_v43 = vpop.f32.mrb[45].mxu1 }
 0x831   :  { %v1401_v45 = vadd.f32 %v1354_v42, %v2459_v44  ;;  %v1403_v3 = vadd.f32 %v1395_v43, %v2460_v46  ;;  %v1356_v1 = vpop.f32.mrb[46].mxu0  ;;  %v1397_v2 = vpop.f32.mrb[46].mxu1 }
 0x832   :  { %v1511_v5 = vmul.f32 -1.442695, %v1400_v21  ;;  %v1357_v6 = vpop.f32.mrb[47].mxu0  ;;  %v1398_v8 = vpop.f32.mrb[47].mxu1 }
 0x833   :  { %v1512_v9 = vmul.f32 -1.442695, %v1401_v45  ;;  %v1513_v12 = vmul.f32 -1.442695, %v1403_v3 }
 0x834   :  { %1682 = vpow2.f32 %v1511_v5 }
 0x835   :  { %1684 = vpow2.f32 %v1512_v9 }
 0x836   :  { %1686 = vpow2.f32 %v1513_v12 }
 0x837   :  { %1688 = vtanh.f32 %v1402_v41 }
 0x83e   :  { %v1683_v7 = vpop.eup %1682 }
 0x83f   :  { %v1685_v59 = vpop.eup %1684  ;;  %v1407_v62 = vadd.f32 1.0, %v1683_v7 }
 0x840   :  { %v1413_v18 = vadd.f32 1.0, %v1685_v59  ;;  %v1687_v10 = vpop.eup %1686 }
 0x841   :  { %1690 = vrcp.f32 %v1407_v62  ;;  %v1689_v14 = vpop.eup %1688  ;;  %v1420_v19 = vadd.f32 1.0, %v1687_v10 }
 0x842   :  { %1692 = vrcp.f32 %v1413_v18 }
 0x843   :  { %1694 = vrcp.f32 %v1420_v19 }
 0x84b   :  { %v1691_v13 = vpop.eup %1690 }
 0x84c   :  { %v1693_v61 = vpop.eup %1692  ;;  %v1424_v15 = vmul.f32 %v1691_v13, %v1689_v14 }
 0x84d   :  { %v1423_v25 = vmul.f32 %v1693_v61, %v1307_v33  ;;  %v1695_v29 = vpop.eup %1694 }
 0x84f   :  { %v1425_v48 = vadd.f32 %v1424_v15, %v1423_v25 }
 0x851   :  { %1696 = vtanh.f32 %v1425_v48 }
 0x85b   :  { %v1697_v17 = vpop.eup %1696 }
 0x85c   :  { %v1427_v11 = vmul.f32 %v1697_v17, %v1695_v29 }
 0x85e   :  { %1429 = vst [vmem:[#allocation6 + $0x38] sm:$0xff] %v1427_v11 }
 0x85f   :  { %1763 = shalt.err (!%p1760_p12)
}
 0x860   :  { %s1764_s24 = scalar_lea.hbm %s2415_s4, 1024 }
 0x861   :  { %p1765_p13 = scmp.ne.s32.totalorder %s2415_s4, %s1764_s24  ;;  %p1768_p0 = scmp.lt.u32.totalorder %s1764_s24, %s2415_s4 }
 0x863   :  { %p1770_p1 = pnand %p1768_p0, %p1765_p13 }
 0x865   :  { %1773 = shalt.err (!%p1770_p1)
}
 0x866   :  { %s1784_s29 = smov 128   ;;  %s1785_s30 = smov 8  }
 0x867   :  { %1441 = dma.vmem_to_hbm [thread:$0]  %s1436_s20, 1024, %s2415_s4, [#allocation5], %s1784_s29, %s1784_s29, %s1785_s30  }
 0x868   :  { %1776 = dma.done.wait [#allocation5], 1024  }
 0x869   :  { %1777 = vsyncadd [#allocation5], 4294966272 }
 0x86a   :  { %1445 = vsyncpa [#allocation4], 1 }
 0x86b   :  { %1446 = vsyncpa [#allocation5], 1 }

</bundles_post_ra>
